<compile_context>
chip_gen: v6e
topology: v6e:2x2x1
jax: 0.10.0
libtpu: 0.0.40
codegen_flags: <defaults>
</compile_context>

<pallas_src>
import jax
import jax.numpy as jnp
from jax.experimental import pallas as pl
from jax.experimental.pallas import tpu as pltpu

BLK = 256    # rows gathered per grid step (amortizes ~0.35 us per-step cost)
DEPTH = 8    # in-flight row DMAs (ring of DMA semaphores)


# ----------------------------------------------------------------------------
# Pallas gather kernel: HBM-resident table, per-row DMA pipeline
# ----------------------------------------------------------------------------
def _gather_kernel(nvalid_ref, idx_ref, table_hbm, out_ref, buf, sem):
    # nvalid_ref : SMEM int32[1]      total number of valid indices (prefetch)
    # idx_ref    : SMEM int32[n_pad]  row indices (prefetch)
    # table_hbm  : HBM  f32[N, D]     full table, never copied to VMEM
    # out_ref    : VMEM f32[BLK, D]   pipelined output tile for this step
    # buf        : VMEM f32[BLK, D]   scratch landing zone for the row DMAs
    # sem        : DMA semaphore ring, shape (DEPTH,)
    base = pl.program_id(0) * BLK
    # Rows this step actually gathers (last tile may be partial; padded rows
    # are never DMA'd and are sliced off by the wrapper).
    rows_here = jnp.minimum(BLK, nvalid_ref[0] - base)

    def start_row(r):
        row = idx_ref[base + r]
        pltpu.make_async_copy(
            table_hbm.at[pl.ds(row, 1), :],
            buf.at[pl.ds(r, 1), :],
            sem.at[r % DEPTH]).start()

    def wait_slot(r):
        # Only shape + semaphore matter for the wait; all copies are (1, D).
        pltpu.make_async_copy(
            table_hbm.at[pl.ds(0, 1), :],
            buf.at[pl.ds(0, 1), :],
            sem.at[r % DEPTH]).wait()

    # Prime the ring with up to DEPTH outstanding row DMAs.
    for r in range(DEPTH):
        @pl.when(r < rows_here)
        def _(r=r):
            start_row(r)

    # Steady state: retire slot of row r, immediately refill with row r+DEPTH.
    @pl.loop(0, rows_here)
    def _(r):
        wait_slot(r)

        @pl.when(r + DEPTH < rows_here)
        def _():
            start_row(r + DEPTH)

    # One dense, lane-wide store into the pipelined output tile.
    out_ref[...] = buf[...]


def pallas_gather(table, indices):
    """Gather rows of `table` (N, D) at `indices` (any shape) -> (n, D)."""
    N, D = table.shape
    idx = jnp.clip(indices.astype(jnp.int32).reshape(-1), 0, N - 1)
    n = idx.shape[0]
    n_pad = ((n + BLK - 1) // BLK) * BLK
    idx_padded = jnp.pad(idx, (0, n_pad - n))     # padded rows never gathered
    nvalid = jnp.array([n], dtype=jnp.int32)

    out = pl.pallas_call(
        _gather_kernel,
        out_shape=jax.ShapeDtypeStruct((n_pad, D), table.dtype),
        grid_spec=pltpu.PrefetchScalarGridSpec(
            num_scalar_prefetch=2,
            grid=(n_pad // BLK,),
            in_specs=[pl.BlockSpec(memory_space=pl.ANY)],   # table stays in HBM
            out_specs=pl.BlockSpec((BLK, D), lambda i, nvalid, idx: (i, 0)),
            scratch_shapes=[
                pltpu.VMEM((BLK, D), table.dtype),
                pltpu.SemaphoreType.DMA((DEPTH,)),
            ],
        ),
        compiler_params=pltpu.CompilerParams(
            dimension_semantics=("parallel",)),
    )(nvalid, idx_padded, table)
    return out[:n]


# ----------------------------------------------------------------------------
# Module re-implementation (parameters built synthetically, no checkpoint load)
# ----------------------------------------------------------------------------
def xavier_uniform(key, shape, dtype=jnp.float32):
    fan_out, fan_in = shape
    limit = (6.0 / (fan_in + fan_out)) ** 0.5
    return jax.random.uniform(key, shape, dtype=dtype, minval=-limit, maxval=limit)


def _fuse_tables(tables):
    """Concatenate non-None tables along the feature dim (done once at init).

    Returns (fused_table_or_None, [per-table column slice or None])."""
    live = [t for t in tables if t is not None]
    if not live:
        return None, [None] * len(tables)
    fused = jnp.concatenate(live, axis=1)
    slices, off = [], 0
    for t in tables:
        if t is None:
            slices.append(None)
        else:
            d = t.shape[1]
            slices.append(slice(off, off + d))
            off += d
    return fused, slices


class KDManagerReverse2KGEv2:
    def __init__(self, key, nentity, nrelation, target_dim, entity_mul,
                 relation_mul, pt1_hidden=64, pt2_hidden=32):
        ks = jax.random.split(key, 10)
        dt = jnp.float32  # TODO(synk): original also supports torch.double.

        # TODO(synk): original loads pretrained RotatE/AttH checkpoints via
        # torch.load; here the pretrained tables are synthesized.
        self.PT_entity_embedding = xavier_uniform(ks[0], (nentity, pt1_hidden * 2), dt)
        self.PT_relation_embedding = xavier_uniform(ks[1], (nrelation, pt1_hidden), dt)
        self.PT_entity_embedding2 = xavier_uniform(ks[2], (nentity, pt2_hidden * 2), dt)
        self.PT_relation_embedding2 = xavier_uniform(ks[3], (nrelation, pt2_hidden), dt)

        FT_dim = 32
        self.FT_entity_embedding1 = xavier_uniform(ks[4], (nentity, FT_dim * 2), dt)
        self.FT_relation_embedding1 = xavier_uniform(ks[5], (nrelation, FT_dim), dt)
        self.FT_entity_embedding2 = xavier_uniform(ks[6], (nentity, FT_dim * 2), dt)
        self.FT_relation_embedding2 = xavier_uniform(ks[7], (nrelation, FT_dim), dt)

        self.entity_embedding = xavier_uniform(
            ks[8], (nentity, target_dim * entity_mul), dt)
        self.relation_embedding = xavier_uniform(
            ks[9], (nrelation, target_dim * relation_mul), dt)

        # Feature-dim fusion, built once: every table sharing an index set is
        # gathered with a single lane-dense pallas_call per forward.
        self._ent_fused, self._ent_slices = _fuse_tables(
            [self.entity_embedding, self.PT_entity_embedding, self.PT_entity_embedding2])
        self._rel_fused, self._rel_slices = _fuse_tables(
            [self.relation_embedding, self.PT_relation_embedding, self.PT_relation_embedding2])
        self._ft_ent_fused, self._ft_ent_slices = _fuse_tables(
            [self.FT_entity_embedding1, self.FT_entity_embedding2])
        self._ft_rel_fused, self._ft_rel_slices = _fuse_tables(
            [self.FT_relation_embedding1, self.FT_relation_embedding2])

    # --- fused extraction helpers (one Pallas gather per fused table) -------
    def _entity_extract_fused(self, fused, slices, sample):
        if fused is None:
            return [(None, None)] * len(slices)
        positive, negative = sample
        batch, neg = negative.shape
        # head rows | pos-tail rows | negative rows, all in one gather.
        idx = jnp.concatenate(
            [positive[:, 0], positive[:, 2], negative.reshape(-1)]).astype(jnp.int32)
        rows = pallas_gather(fused, idx)                # (batch*(2+neg), D_total)
        heads = rows[:batch]
        pos_t = rows[batch:2 * batch]
        neg_t = rows[2 * batch:].reshape(batch, neg, -1)
        outs = []
        for sl in slices:
            if sl is None:
                outs.append((None, None))
                continue
            head = heads[:, None, sl]
            tail = jnp.concatenate([pos_t[:, None, sl], neg_t[:, :, sl]], axis=1)
            outs.append((head, tail))
        return outs

    def _relation_extract_fused(self, fused, slices, sample):
        if fused is None:
            return [None] * len(slices)
        positive, _ = sample
        rows = pallas_gather(fused, positive[:, 1])      # (batch, D_total)
        return [None if sl is None else rows[:, None, sl] for sl in slices]

    # --- forward passes ------------------------------------------------------
    def forward(self, sample):
        ent = self._entity_extract_fused(self._ent_fused, self._ent_slices, sample)
        rel = self._relation_extract_fused(self._rel_fused, self._rel_slices, sample)
        (head, tail), (PT_head1, PT_tail1), (PT_head2, PT_tail2) = ent
        relation, PT_relation1, PT_relation2 = rel
        return (head, relation, tail,
                PT_head1, PT_relation1, PT_tail1,
                PT_head2, PT_relation2, PT_tail2)

    def forward_(self, sample):
        ent = self._entity_extract_fused(self._ft_ent_fused, self._ft_ent_slices, sample)
        rel = self._relation_extract_fused(self._ft_rel_fused, self._ft_rel_slices, sample)
        (FT_head1, FT_tail1), (FT_head2, FT_tail2) = ent
        FT_relation1, FT_relation2 = rel
        return FT_head1, FT_relation1, FT_tail1, FT_head2, FT_relation2, FT_tail2


if __name__ == "__main__":
    key = jax.random.PRNGKey(0)
    k_param, k_h, k_r, k_t, k_neg = jax.random.split(key, 5)

    nentity, nrelation = 64, 16
    target_dim, entity_mul, relation_mul = 32, 2, 1
    batch, neg = 2, 8

    mgr = KDManagerReverse2KGEv2(k_param, nentity, nrelation,
                                 target_dim, entity_mul, relation_mul)

    positive = jnp.stack([
        jax.random.randint(k_h, (batch,), 0, nentity, dtype=jnp.int32),
        jax.random.randint(k_r, (batch,), 0, nrelation, dtype=jnp.int32),
        jax.random.randint(k_t, (batch,), 0, nentity, dtype=jnp.int32),
    ], axis=1)
    negative = jax.random.randint(k_neg, (batch, neg), 0, nentity, dtype=jnp.int32)
    sample = (positive, negative)

    fwd = jax.jit(lambda pos, nneg: mgr.forward((pos, nneg)))
    outs = jax.block_until_ready(fwd(positive, negative))

    (head, relation, tail,
     PT_head1, PT_relation1, PT_tail1,
     PT_head2, PT_relation2, PT_tail2) = outs

    # --- plain-JAX reference gathers ----------------------------------------
    def ref_entity(tab):
        h = tab[positive[:, 0]][:, None, :]
        t = jnp.concatenate(
            (tab[positive[:, 2]][:, None, :],
             tab[negative.reshape(-1)].reshape(batch, neg, -1)), axis=1)
        return h, t

    def ref_rel(tab):
        return tab[positive[:, 1]][:, None, :]

    checks = [
        (head, ref_entity(mgr.entity_embedding)[0]),
        (tail, ref_entity(mgr.entity_embedding)[1]),
        (relation, ref_rel(mgr.relation_embedding)),
        (PT_head1, ref_entity(mgr.PT_entity_embedding)[0]),
        (PT_tail1, ref_entity(mgr.PT_entity_embedding)[1]),
        (PT_relation1, ref_rel(mgr.PT_relation_embedding)),
        (PT_head2, ref_entity(mgr.PT_entity_embedding2)[0]),
        (PT_tail2, ref_entity(mgr.PT_entity_embedding2)[1]),
        (PT_relation2, ref_rel(mgr.PT_relation_embedding2)),
    ]
    for got, want in checks:
        assert got.shape == want.shape, (got.shape, want.shape)
        assert jnp.allclose(got, want)

    assert head.shape == (batch, 1, target_dim * entity_mul)
    assert relation.shape == (batch, 1, target_dim * relation_mul)
    assert tail.shape == (batch, 1 + neg, target_dim * entity_mul)

    # secondary (fine-tune) path
    outs_ = jax.block_until_ready(
        jax.jit(lambda pos, nneg: mgr.forward_((pos, nneg)))(positive, negative))
    FT_head1, FT_relation1, FT_tail1, FT_head2, FT_relation2, FT_tail2 = outs_
    assert jnp.allclose(FT_head1, ref_entity(mgr.FT_entity_embedding1)[0])
    assert jnp.allclose(FT_tail2, ref_entity(mgr.FT_entity_embedding2)[1])
    assert jnp.allclose(FT_relation1, ref_rel(mgr.FT_relation_embedding1))
    assert jnp.allclose(FT_relation2, ref_rel(mgr.FT_relation_embedding2))

    print("KERNEL_OK")
</pallas_src>

<mosaic_0001>
module attributes {stable_mosaic.version = 11 : i64} {
  func.func @_gather_kernel(%arg0: i32, %arg1: memref<1xi32, #tpu.memory_space<smem>>, %arg2: memref<256xi32, #tpu.memory_space<smem>>, %arg3: memref<16x128xf32, #tpu.memory_space<any>>, %arg4: memref<256x128xf32, #tpu.memory_space<vmem>>, %arg5: memref<256x128xf32, #tpu.memory_space<vmem>>, %arg6: memref<8x!tpu.dma_semaphore, #tpu.memory_space<semaphore_mem>>) attributes {dimension_semantics = [#tpu.dimension_semantics<parallel>], iteration_bounds = array<i64: 1>, scalar_prefetch = 2 : i64, scratch_operands = 2 : i64, tpu.core_type = #tpu.core_type<tc>, window_params = [{}, {transform_indices = @transform_1, window_bounds = array<i64: 256, 128>}]} {
    %c256_i32 = arith.constant 256 : i32
    %0 = arith.muli %arg0, %c256_i32 : i32
    %c0 = arith.constant 0 : index
    %1 = memref.load %arg1[%c0] : memref<1xi32, #tpu.memory_space<smem>>
    %2 = arith.subi %1, %0 : i32
    %c256_i32_0 = arith.constant 256 : i32
    %3 = arith.minsi %c256_i32_0, %2 : i32
    %c0_i32 = arith.constant 0 : i32
    %4 = arith.cmpi sgt, %3, %c0_i32 : i32
    %5 = arith.extui %4 : i1 to i32
    %c0_i32_1 = arith.constant 0 : i32
    %6 = arith.cmpi ne, %5, %c0_i32_1 : i32
    scf.if %6 {
      %c0_i32_21 = arith.constant 0 : i32
      %36 = arith.addi %0, %c0_i32_21 : i32
      %37 = arith.index_cast %36 : i32 to index
      %38 = memref.load %arg2[%37] : memref<256xi32, #tpu.memory_space<smem>>
      %c0_i32_22 = arith.constant 0 : i32
      %c0_i32_23 = arith.constant 0 : i32
      %39 = tpu.memref_slice %arg3[%38, %c0_i32_23] : memref<16x128xf32, #tpu.memory_space<any>> -> memref<1x128xf32, #tpu.memory_space<any>>
      %c0_i32_24 = arith.constant 0 : i32
      %c0_i32_25 = arith.constant 0 : i32
      %40 = tpu.memref_slice %arg5[%c0_i32_24, %c0_i32_25] : memref<256x128xf32, #tpu.memory_space<vmem>> -> memref<1x128xf32, #tpu.memory_space<vmem>>
      %41 = tpu.memref_slice %arg6[%c0_i32_22] : memref<8x!tpu.dma_semaphore, #tpu.memory_space<semaphore_mem>> -> memref<1x!tpu.dma_semaphore, #tpu.memory_space<semaphore_mem>>
      %42 = tpu.memref_squeeze %41 : memref<1x!tpu.dma_semaphore, #tpu.memory_space<semaphore_mem>> -> memref<!tpu.dma_semaphore, #tpu.memory_space<semaphore_mem>>
      tpu.enqueue_dma source(%39 : memref<1x128xf32, #tpu.memory_space<any>>) target(%40 : memref<1x128xf32, #tpu.memory_space<vmem>>) target_semaphore(%42 : memref<!tpu.dma_semaphore, #tpu.memory_space<semaphore_mem>>)
    } else {
    }
    %c1_i32 = arith.constant 1 : i32
    %7 = arith.cmpi sgt, %3, %c1_i32 : i32
    %8 = arith.extui %7 : i1 to i32
    %c0_i32_2 = arith.constant 0 : i32
    %9 = arith.cmpi ne, %8, %c0_i32_2 : i32
    scf.if %9 {
      %c1_i32_21 = arith.constant 1 : i32
      %36 = arith.addi %0, %c1_i32_21 : i32
      %37 = arith.index_cast %36 : i32 to index
      %38 = memref.load %arg2[%37] : memref<256xi32, #tpu.memory_space<smem>>
      %c1_i32_22 = arith.constant 1 : i32
      %c0_i32_23 = arith.constant 0 : i32
      %39 = tpu.memref_slice %arg3[%38, %c0_i32_23] : memref<16x128xf32, #tpu.memory_space<any>> -> memref<1x128xf32, #tpu.memory_space<any>>
      %c1_i32_24 = arith.constant 1 : i32
      %c0_i32_25 = arith.constant 0 : i32
      %40 = tpu.memref_slice %arg5[%c1_i32_24, %c0_i32_25] : memref<256x128xf32, #tpu.memory_space<vmem>> -> memref<1x128xf32, #tpu.memory_space<vmem>>
      %41 = tpu.memref_slice %arg6[%c1_i32_22] : memref<8x!tpu.dma_semaphore, #tpu.memory_space<semaphore_mem>> -> memref<1x!tpu.dma_semaphore, #tpu.memory_space<semaphore_mem>>
      %42 = tpu.memref_squeeze %41 : memref<1x!tpu.dma_semaphore, #tpu.memory_space<semaphore_mem>> -> memref<!tpu.dma_semaphore, #tpu.memory_space<semaphore_mem>>
      tpu.enqueue_dma source(%39 : memref<1x128xf32, #tpu.memory_space<any>>) target(%40 : memref<1x128xf32, #tpu.memory_space<vmem>>) target_semaphore(%42 : memref<!tpu.dma_semaphore, #tpu.memory_space<semaphore_mem>>)
    } else {
    }
    %c2_i32 = arith.constant 2 : i32
    %10 = arith.cmpi sgt, %3, %c2_i32 : i32
    %11 = arith.extui %10 : i1 to i32
    %c0_i32_3 = arith.constant 0 : i32
    %12 = arith.cmpi ne, %11, %c0_i32_3 : i32
    scf.if %12 {
      %c2_i32_21 = arith.constant 2 : i32
      %36 = arith.addi %0, %c2_i32_21 : i32
      %37 = arith.index_cast %36 : i32 to index
      %38 = memref.load %arg2[%37] : memref<256xi32, #tpu.memory_space<smem>>
      %c2_i32_22 = arith.constant 2 : i32
      %c0_i32_23 = arith.constant 0 : i32
      %39 = tpu.memref_slice %arg3[%38, %c0_i32_23] : memref<16x128xf32, #tpu.memory_space<any>> -> memref<1x128xf32, #tpu.memory_space<any>>
      %c2_i32_24 = arith.constant 2 : i32
      %c0_i32_25 = arith.constant 0 : i32
      %40 = tpu.memref_slice %arg5[%c2_i32_24, %c0_i32_25] : memref<256x128xf32, #tpu.memory_space<vmem>> -> memref<1x128xf32, #tpu.memory_space<vmem>>
      %41 = tpu.memref_slice %arg6[%c2_i32_22] : memref<8x!tpu.dma_semaphore, #tpu.memory_space<semaphore_mem>> -> memref<1x!tpu.dma_semaphore, #tpu.memory_space<semaphore_mem>>
      %42 = tpu.memref_squeeze %41 : memref<1x!tpu.dma_semaphore, #tpu.memory_space<semaphore_mem>> -> memref<!tpu.dma_semaphore, #tpu.memory_space<semaphore_mem>>
      tpu.enqueue_dma source(%39 : memref<1x128xf32, #tpu.memory_space<any>>) target(%40 : memref<1x128xf32, #tpu.memory_space<vmem>>) target_semaphore(%42 : memref<!tpu.dma_semaphore, #tpu.memory_space<semaphore_mem>>)
    } else {
    }
    %c3_i32 = arith.constant 3 : i32
    %13 = arith.cmpi sgt, %3, %c3_i32 : i32
    %14 = arith.extui %13 : i1 to i32
    %c0_i32_4 = arith.constant 0 : i32
    %15 = arith.cmpi ne, %14, %c0_i32_4 : i32
    scf.if %15 {
      %c3_i32_21 = arith.constant 3 : i32
      %36 = arith.addi %0, %c3_i32_21 : i32
      %37 = arith.index_cast %36 : i32 to index
      %38 = memref.load %arg2[%37] : memref<256xi32, #tpu.memory_space<smem>>
      %c3_i32_22 = arith.constant 3 : i32
      %c0_i32_23 = arith.constant 0 : i32
      %39 = tpu.memref_slice %arg3[%38, %c0_i32_23] : memref<16x128xf32, #tpu.memory_space<any>> -> memref<1x128xf32, #tpu.memory_space<any>>
      %c3_i32_24 = arith.constant 3 : i32
      %c0_i32_25 = arith.constant 0 : i32
      %40 = tpu.memref_slice %arg5[%c3_i32_24, %c0_i32_25] : memref<256x128xf32, #tpu.memory_space<vmem>> -> memref<1x128xf32, #tpu.memory_space<vmem>>
      %41 = tpu.memref_slice %arg6[%c3_i32_22] : memref<8x!tpu.dma_semaphore, #tpu.memory_space<semaphore_mem>> -> memref<1x!tpu.dma_semaphore, #tpu.memory_space<semaphore_mem>>
      %42 = tpu.memref_squeeze %41 : memref<1x!tpu.dma_semaphore, #tpu.memory_space<semaphore_mem>> -> memref<!tpu.dma_semaphore, #tpu.memory_space<semaphore_mem>>
      tpu.enqueue_dma source(%39 : memref<1x128xf32, #tpu.memory_space<any>>) target(%40 : memref<1x128xf32, #tpu.memory_space<vmem>>) target_semaphore(%42 : memref<!tpu.dma_semaphore, #tpu.memory_space<semaphore_mem>>)
    } else {
    }
    %c4_i32 = arith.constant 4 : i32
    %16 = arith.cmpi sgt, %3, %c4_i32 : i32
    %17 = arith.extui %16 : i1 to i32
    %c0_i32_5 = arith.constant 0 : i32
    %18 = arith.cmpi ne, %17, %c0_i32_5 : i32
    scf.if %18 {
      %c4_i32_21 = arith.constant 4 : i32
      %36 = arith.addi %0, %c4_i32_21 : i32
      %37 = arith.index_cast %36 : i32 to index
      %38 = memref.load %arg2[%37] : memref<256xi32, #tpu.memory_space<smem>>
      %c4_i32_22 = arith.constant 4 : i32
      %c0_i32_23 = arith.constant 0 : i32
      %39 = tpu.memref_slice %arg3[%38, %c0_i32_23] : memref<16x128xf32, #tpu.memory_space<any>> -> memref<1x128xf32, #tpu.memory_space<any>>
      %c4_i32_24 = arith.constant 4 : i32
      %c0_i32_25 = arith.constant 0 : i32
      %40 = tpu.memref_slice %arg5[%c4_i32_24, %c0_i32_25] : memref<256x128xf32, #tpu.memory_space<vmem>> -> memref<1x128xf32, #tpu.memory_space<vmem>>
      %41 = tpu.memref_slice %arg6[%c4_i32_22] : memref<8x!tpu.dma_semaphore, #tpu.memory_space<semaphore_mem>> -> memref<1x!tpu.dma_semaphore, #tpu.memory_space<semaphore_mem>>
      %42 = tpu.memref_squeeze %41 : memref<1x!tpu.dma_semaphore, #tpu.memory_space<semaphore_mem>> -> memref<!tpu.dma_semaphore, #tpu.memory_space<semaphore_mem>>
      tpu.enqueue_dma source(%39 : memref<1x128xf32, #tpu.memory_space<any>>) target(%40 : memref<1x128xf32, #tpu.memory_space<vmem>>) target_semaphore(%42 : memref<!tpu.dma_semaphore, #tpu.memory_space<semaphore_mem>>)
    } else {
    }
    %c5_i32 = arith.constant 5 : i32
    %19 = arith.cmpi sgt, %3, %c5_i32 : i32
    %20 = arith.extui %19 : i1 to i32
    %c0_i32_6 = arith.constant 0 : i32
    %21 = arith.cmpi ne, %20, %c0_i32_6 : i32
    scf.if %21 {
      %c5_i32_21 = arith.constant 5 : i32
      %36 = arith.addi %0, %c5_i32_21 : i32
      %37 = arith.index_cast %36 : i32 to index
      %38 = memref.load %arg2[%37] : memref<256xi32, #tpu.memory_space<smem>>
      %c5_i32_22 = arith.constant 5 : i32
      %c0_i32_23 = arith.constant 0 : i32
      %39 = tpu.memref_slice %arg3[%38, %c0_i32_23] : memref<16x128xf32, #tpu.memory_space<any>> -> memref<1x128xf32, #tpu.memory_space<any>>
      %c5_i32_24 = arith.constant 5 : i32
      %c0_i32_25 = arith.constant 0 : i32
      %40 = tpu.memref_slice %arg5[%c5_i32_24, %c0_i32_25] : memref<256x128xf32, #tpu.memory_space<vmem>> -> memref<1x128xf32, #tpu.memory_space<vmem>>
      %41 = tpu.memref_slice %arg6[%c5_i32_22] : memref<8x!tpu.dma_semaphore, #tpu.memory_space<semaphore_mem>> -> memref<1x!tpu.dma_semaphore, #tpu.memory_space<semaphore_mem>>
      %42 = tpu.memref_squeeze %41 : memref<1x!tpu.dma_semaphore, #tpu.memory_space<semaphore_mem>> -> memref<!tpu.dma_semaphore, #tpu.memory_space<semaphore_mem>>
      tpu.enqueue_dma source(%39 : memref<1x128xf32, #tpu.memory_space<any>>) target(%40 : memref<1x128xf32, #tpu.memory_space<vmem>>) target_semaphore(%42 : memref<!tpu.dma_semaphore, #tpu.memory_space<semaphore_mem>>)
    } else {
    }
    %c6_i32 = arith.constant 6 : i32
    %22 = arith.cmpi sgt, %3, %c6_i32 : i32
    %23 = arith.extui %22 : i1 to i32
    %c0_i32_7 = arith.constant 0 : i32
    %24 = arith.cmpi ne, %23, %c0_i32_7 : i32
    scf.if %24 {
      %c6_i32_21 = arith.constant 6 : i32
      %36 = arith.addi %0, %c6_i32_21 : i32
      %37 = arith.index_cast %36 : i32 to index
      %38 = memref.load %arg2[%37] : memref<256xi32, #tpu.memory_space<smem>>
      %c6_i32_22 = arith.constant 6 : i32
      %c0_i32_23 = arith.constant 0 : i32
      %39 = tpu.memref_slice %arg3[%38, %c0_i32_23] : memref<16x128xf32, #tpu.memory_space<any>> -> memref<1x128xf32, #tpu.memory_space<any>>
      %c6_i32_24 = arith.constant 6 : i32
      %c0_i32_25 = arith.constant 0 : i32
      %40 = tpu.memref_slice %arg5[%c6_i32_24, %c0_i32_25] : memref<256x128xf32, #tpu.memory_space<vmem>> -> memref<1x128xf32, #tpu.memory_space<vmem>>
      %41 = tpu.memref_slice %arg6[%c6_i32_22] : memref<8x!tpu.dma_semaphore, #tpu.memory_space<semaphore_mem>> -> memref<1x!tpu.dma_semaphore, #tpu.memory_space<semaphore_mem>>
      %42 = tpu.memref_squeeze %41 : memref<1x!tpu.dma_semaphore, #tpu.memory_space<semaphore_mem>> -> memref<!tpu.dma_semaphore, #tpu.memory_space<semaphore_mem>>
      tpu.enqueue_dma source(%39 : memref<1x128xf32, #tpu.memory_space<any>>) target(%40 : memref<1x128xf32, #tpu.memory_space<vmem>>) target_semaphore(%42 : memref<!tpu.dma_semaphore, #tpu.memory_space<semaphore_mem>>)
    } else {
    }
    %c7_i32 = arith.constant 7 : i32
    %25 = arith.cmpi sgt, %3, %c7_i32 : i32
    %26 = arith.extui %25 : i1 to i32
    %c0_i32_8 = arith.constant 0 : i32
    %27 = arith.cmpi ne, %26, %c0_i32_8 : i32
    scf.if %27 {
      %c7_i32_21 = arith.constant 7 : i32
      %36 = arith.addi %0, %c7_i32_21 : i32
      %37 = arith.index_cast %36 : i32 to index
      %38 = memref.load %arg2[%37] : memref<256xi32, #tpu.memory_space<smem>>
      %c7_i32_22 = arith.constant 7 : i32
      %c0_i32_23 = arith.constant 0 : i32
      %39 = tpu.memref_slice %arg3[%38, %c0_i32_23] : memref<16x128xf32, #tpu.memory_space<any>> -> memref<1x128xf32, #tpu.memory_space<any>>
      %c7_i32_24 = arith.constant 7 : i32
      %c0_i32_25 = arith.constant 0 : i32
      %40 = tpu.memref_slice %arg5[%c7_i32_24, %c0_i32_25] : memref<256x128xf32, #tpu.memory_space<vmem>> -> memref<1x128xf32, #tpu.memory_space<vmem>>
      %41 = tpu.memref_slice %arg6[%c7_i32_22] : memref<8x!tpu.dma_semaphore, #tpu.memory_space<semaphore_mem>> -> memref<1x!tpu.dma_semaphore, #tpu.memory_space<semaphore_mem>>
      %42 = tpu.memref_squeeze %41 : memref<1x!tpu.dma_semaphore, #tpu.memory_space<semaphore_mem>> -> memref<!tpu.dma_semaphore, #tpu.memory_space<semaphore_mem>>
      tpu.enqueue_dma source(%39 : memref<1x128xf32, #tpu.memory_space<any>>) target(%40 : memref<1x128xf32, #tpu.memory_space<vmem>>) target_semaphore(%42 : memref<!tpu.dma_semaphore, #tpu.memory_space<semaphore_mem>>)
    } else {
    }
    %c0_i32_9 = arith.constant 0 : i32
    %28 = arith.subi %3, %c0_i32_9 : i32
    %c1_i32_10 = arith.constant 1 : i32
    %c1_i32_11 = arith.constant 1 : i32
    %29 = arith.subi %c1_i32_10, %c1_i32_11 : i32
    %30 = arith.addi %28, %29 : i32
    %c1_i32_12 = arith.constant 1 : i32
    %31 = arith.divsi %30, %c1_i32_12 : i32
    %c1_i32_13 = arith.constant 1 : i32
    %c0_i32_14 = arith.constant 0 : i32
    %c0_i32_15 = arith.constant 0 : i32
    %32 = arith.subi %31, %c0_i32_15 : i32
    %33 = arith.addi %c0_i32_15, %32 : i32
    %c1_i32_16 = arith.constant 1 : i32
    scf.for %arg7 = %c0_i32_15 to %33 step %c1_i32_16  : i32 {
      %36 = arith.muli %arg7, %c1_i32_13 : i32
      %37 = arith.addi %c0_i32_14, %36 : i32
      %c8_i32 = arith.constant 8 : i32
      %c0_i32_21 = arith.constant 0 : i32
      %38 = arith.cmpi eq, %c8_i32, %c0_i32_21 : i32
      %c1_i32_22 = arith.constant 1 : i32
      %39 = arith.select %38, %c1_i32_22, %c8_i32 : i32
      %40 = arith.remsi %37, %39 : i32
      %c0_i32_23 = arith.constant 0 : i32
      %41 = arith.cmpi ne, %40, %c0_i32_23 : i32
      %c0_i32_24 = arith.constant 0 : i32
      %42 = arith.cmpi slt, %40, %c0_i32_24 : i32
      %c0_i32_25 = arith.constant 0 : i32
      %43 = arith.cmpi slt, %39, %c0_i32_25 : i32
      %44 = arith.xori %42, %43 : i1
      %45 = arith.andi %44, %41 : i1
      %46 = arith.addi %40, %39 : i32
      %47 = arith.select %45, %46, %40 : i32
      %c0_i32_26 = arith.constant 0 : i32
      %c0_i32_27 = arith.constant 0 : i32
      %48 = tpu.memref_slice %arg3[%c0_i32_26, %c0_i32_27] : memref<16x128xf32, #tpu.memory_space<any>> -> memref<1x128xf32, #tpu.memory_space<any>>
      %c0_i32_28 = arith.constant 0 : i32
      %c0_i32_29 = arith.constant 0 : i32
      %49 = tpu.memref_slice %arg5[%c0_i32_28, %c0_i32_29] : memref<256x128xf32, #tpu.memory_space<vmem>> -> memref<1x128xf32, #tpu.memory_space<vmem>>
      %50 = tpu.memref_slice %arg6[%47] : memref<8x!tpu.dma_semaphore, #tpu.memory_space<semaphore_mem>> -> memref<1x!tpu.dma_semaphore, #tpu.memory_space<semaphore_mem>>
      %51 = tpu.memref_squeeze %50 : memref<1x!tpu.dma_semaphore, #tpu.memory_space<semaphore_mem>> -> memref<!tpu.dma_semaphore, #tpu.memory_space<semaphore_mem>>
      tpu.wait_dma2 semaphore(%51 : memref<!tpu.dma_semaphore, #tpu.memory_space<semaphore_mem>>) src(%48 : memref<1x128xf32, #tpu.memory_space<any>>) dst(%49 : memref<1x128xf32, #tpu.memory_space<vmem>>)
      %c8_i32_30 = arith.constant 8 : i32
      %52 = arith.addi %37, %c8_i32_30 : i32
      %53 = arith.cmpi slt, %52, %3 : i32
      %54 = arith.extui %53 : i1 to i32
      %c0_i32_31 = arith.constant 0 : i32
      %55 = arith.cmpi ne, %54, %c0_i32_31 : i32
      scf.if %55 {
        %c8_i32_32 = arith.constant 8 : i32
        %56 = arith.addi %37, %c8_i32_32 : i32
        %57 = arith.addi %0, %56 : i32
        %58 = arith.index_cast %57 : i32 to index
        %59 = memref.load %arg2[%58] : memref<256xi32, #tpu.memory_space<smem>>
        %c8_i32_33 = arith.constant 8 : i32
        %c0_i32_34 = arith.constant 0 : i32
        %60 = arith.cmpi eq, %c8_i32_33, %c0_i32_34 : i32
        %c1_i32_35 = arith.constant 1 : i32
        %61 = arith.select %60, %c1_i32_35, %c8_i32_33 : i32
        %62 = arith.remsi %56, %61 : i32
        %c0_i32_36 = arith.constant 0 : i32
        %63 = arith.cmpi ne, %62, %c0_i32_36 : i32
        %c0_i32_37 = arith.constant 0 : i32
        %64 = arith.cmpi slt, %62, %c0_i32_37 : i32
        %c0_i32_38 = arith.constant 0 : i32
        %65 = arith.cmpi slt, %61, %c0_i32_38 : i32
        %66 = arith.xori %64, %65 : i1
        %67 = arith.andi %66, %63 : i1
        %68 = arith.addi %62, %61 : i32
        %69 = arith.select %67, %68, %62 : i32
        %c0_i32_39 = arith.constant 0 : i32
        %70 = tpu.memref_slice %arg3[%59, %c0_i32_39] : memref<16x128xf32, #tpu.memory_space<any>> -> memref<1x128xf32, #tpu.memory_space<any>>
        %c0_i32_40 = arith.constant 0 : i32
        %71 = tpu.memref_slice %arg5[%56, %c0_i32_40] : memref<256x128xf32, #tpu.memory_space<vmem>> -> memref<1x128xf32, #tpu.memory_space<vmem>>
        %72 = tpu.memref_slice %arg6[%69] : memref<8x!tpu.dma_semaphore, #tpu.memory_space<semaphore_mem>> -> memref<1x!tpu.dma_semaphore, #tpu.memory_space<semaphore_mem>>
        %73 = tpu.memref_squeeze %72 : memref<1x!tpu.dma_semaphore, #tpu.memory_space<semaphore_mem>> -> memref<!tpu.dma_semaphore, #tpu.memory_space<semaphore_mem>>
        tpu.enqueue_dma source(%70 : memref<1x128xf32, #tpu.memory_space<any>>) target(%71 : memref<1x128xf32, #tpu.memory_space<vmem>>) target_semaphore(%73 : memref<!tpu.dma_semaphore, #tpu.memory_space<semaphore_mem>>)
      } else {
      }
    }
    %c0_17 = arith.constant 0 : index
    %c0_18 = arith.constant 0 : index
    %34 = vector.load %arg5[%c0_17, %c0_18] : memref<256x128xf32, #tpu.memory_space<vmem>>, vector<256x128xf32>
    %c0_19 = arith.constant 0 : index
    %c0_20 = arith.constant 0 : index
    %35 = vector.load %arg4[%c0_19, %c0_20] : memref<256x128xf32, #tpu.memory_space<vmem>>, vector<256x128xf32>
    tpu.vector_store %arg4[%c0_19, %c0_20], %34 {strides = array<i32>} : memref<256x128xf32, #tpu.memory_space<vmem>>, vector<256x128xf32>,
    return
  }
  func.func @transform_1(%arg0: i32, %arg1: memref<1xi32, #tpu.memory_space<smem>>, %arg2: memref<256xi32, #tpu.memory_space<smem>>) -> (i32, i32) {
    %c0_i32 = arith.constant 0 : i32
    %c0_i32_0 = arith.constant 0 : i32
    return %arg0, %c0_i32 : i32, i32
  }
}

module attributes {stable_mosaic.version = 11 : i64} {
  func.func @_gather_kernel(%arg0: i32, %arg1: memref<1xi32, #tpu.memory_space<smem>>, %arg2: memref<256xi32, #tpu.memory_space<smem>>, %arg3: memref<64x256xf32, #tpu.memory_space<any>>, %arg4: memref<256x256xf32, #tpu.memory_space<vmem>>, %arg5: memref<256x256xf32, #tpu.memory_space<vmem>>, %arg6: memref<8x!tpu.dma_semaphore, #tpu.memory_space<semaphore_mem>>) attributes {dimension_semantics = [#tpu.dimension_semantics<parallel>], iteration_bounds = array<i64: 1>, scalar_prefetch = 2 : i64, scratch_operands = 2 : i64, tpu.core_type = #tpu.core_type<tc>, window_params = [{}, {transform_indices = @transform_1, window_bounds = array<i64: 256, 256>}]} {
    %c256_i32 = arith.constant 256 : i32
    %0 = arith.muli %arg0, %c256_i32 : i32
    %c0 = arith.constant 0 : index
    %1 = memref.load %arg1[%c0] : memref<1xi32, #tpu.memory_space<smem>>
    %2 = arith.subi %1, %0 : i32
    %c256_i32_0 = arith.constant 256 : i32
    %3 = arith.minsi %c256_i32_0, %2 : i32
    %c0_i32 = arith.constant 0 : i32
    %4 = arith.cmpi sgt, %3, %c0_i32 : i32
    %5 = arith.extui %4 : i1 to i32
    %c0_i32_1 = arith.constant 0 : i32
    %6 = arith.cmpi ne, %5, %c0_i32_1 : i32
    scf.if %6 {
      %c0_i32_21 = arith.constant 0 : i32
      %36 = arith.addi %0, %c0_i32_21 : i32
      %37 = arith.index_cast %36 : i32 to index
      %38 = memref.load %arg2[%37] : memref<256xi32, #tpu.memory_space<smem>>
      %c0_i32_22 = arith.constant 0 : i32
      %c0_i32_23 = arith.constant 0 : i32
      %39 = tpu.memref_slice %arg3[%38, %c0_i32_23] : memref<64x256xf32, #tpu.memory_space<any>> -> memref<1x256xf32, #tpu.memory_space<any>>
      %c0_i32_24 = arith.constant 0 : i32
      %c0_i32_25 = arith.constant 0 : i32
      %40 = tpu.memref_slice %arg5[%c0_i32_24, %c0_i32_25] : memref<256x256xf32, #tpu.memory_space<vmem>> -> memref<1x256xf32, #tpu.memory_space<vmem>>
      %41 = tpu.memref_slice %arg6[%c0_i32_22] : memref<8x!tpu.dma_semaphore, #tpu.memory_space<semaphore_mem>> -> memref<1x!tpu.dma_semaphore, #tpu.memory_space<semaphore_mem>>
      %42 = tpu.memref_squeeze %41 : memref<1x!tpu.dma_semaphore, #tpu.memory_space<semaphore_mem>> -> memref<!tpu.dma_semaphore, #tpu.memory_space<semaphore_mem>>
      tpu.enqueue_dma source(%39 : memref<1x256xf32, #tpu.memory_space<any>>) target(%40 : memref<1x256xf32, #tpu.memory_space<vmem>>) target_semaphore(%42 : memref<!tpu.dma_semaphore, #tpu.memory_space<semaphore_mem>>)
    } else {
    }
    %c1_i32 = arith.constant 1 : i32
    %7 = arith.cmpi sgt, %3, %c1_i32 : i32
    %8 = arith.extui %7 : i1 to i32
    %c0_i32_2 = arith.constant 0 : i32
    %9 = arith.cmpi ne, %8, %c0_i32_2 : i32
    scf.if %9 {
      %c1_i32_21 = arith.constant 1 : i32
      %36 = arith.addi %0, %c1_i32_21 : i32
      %37 = arith.index_cast %36 : i32 to index
      %38 = memref.load %arg2[%37] : memref<256xi32, #tpu.memory_space<smem>>
      %c1_i32_22 = arith.constant 1 : i32
      %c0_i32_23 = arith.constant 0 : i32
      %39 = tpu.memref_slice %arg3[%38, %c0_i32_23] : memref<64x256xf32, #tpu.memory_space<any>> -> memref<1x256xf32, #tpu.memory_space<any>>
      %c1_i32_24 = arith.constant 1 : i32
      %c0_i32_25 = arith.constant 0 : i32
      %40 = tpu.memref_slice %arg5[%c1_i32_24, %c0_i32_25] : memref<256x256xf32, #tpu.memory_space<vmem>> -> memref<1x256xf32, #tpu.memory_space<vmem>>
      %41 = tpu.memref_slice %arg6[%c1_i32_22] : memref<8x!tpu.dma_semaphore, #tpu.memory_space<semaphore_mem>> -> memref<1x!tpu.dma_semaphore, #tpu.memory_space<semaphore_mem>>
      %42 = tpu.memref_squeeze %41 : memref<1x!tpu.dma_semaphore, #tpu.memory_space<semaphore_mem>> -> memref<!tpu.dma_semaphore, #tpu.memory_space<semaphore_mem>>
      tpu.enqueue_dma source(%39 : memref<1x256xf32, #tpu.memory_space<any>>) target(%40 : memref<1x256xf32, #tpu.memory_space<vmem>>) target_semaphore(%42 : memref<!tpu.dma_semaphore, #tpu.memory_space<semaphore_mem>>)
    } else {
    }
    %c2_i32 = arith.constant 2 : i32
    %10 = arith.cmpi sgt, %3, %c2_i32 : i32
    %11 = arith.extui %10 : i1 to i32
    %c0_i32_3 = arith.constant 0 : i32
    %12 = arith.cmpi ne, %11, %c0_i32_3 : i32
    scf.if %12 {
      %c2_i32_21 = arith.constant 2 : i32
      %36 = arith.addi %0, %c2_i32_21 : i32
      %37 = arith.index_cast %36 : i32 to index
      %38 = memref.load %arg2[%37] : memref<256xi32, #tpu.memory_space<smem>>
      %c2_i32_22 = arith.constant 2 : i32
      %c0_i32_23 = arith.constant 0 : i32
      %39 = tpu.memref_slice %arg3[%38, %c0_i32_23] : memref<64x256xf32, #tpu.memory_space<any>> -> memref<1x256xf32, #tpu.memory_space<any>>
      %c2_i32_24 = arith.constant 2 : i32
      %c0_i32_25 = arith.constant 0 : i32
      %40 = tpu.memref_slice %arg5[%c2_i32_24, %c0_i32_25] : memref<256x256xf32, #tpu.memory_space<vmem>> -> memref<1x256xf32, #tpu.memory_space<vmem>>
      %41 = tpu.memref_slice %arg6[%c2_i32_22] : memref<8x!tpu.dma_semaphore, #tpu.memory_space<semaphore_mem>> -> memref<1x!tpu.dma_semaphore, #tpu.memory_space<semaphore_mem>>
      %42 = tpu.memref_squeeze %41 : memref<1x!tpu.dma_semaphore, #tpu.memory_space<semaphore_mem>> -> memref<!tpu.dma_semaphore, #tpu.memory_space<semaphore_mem>>
      tpu.enqueue_dma source(%39 : memref<1x256xf32, #tpu.memory_space<any>>) target(%40 : memref<1x256xf32, #tpu.memory_space<vmem>>) target_semaphore(%42 : memref<!tpu.dma_semaphore, #tpu.memory_space<semaphore_mem>>)
    } else {
    }
    %c3_i32 = arith.constant 3 : i32
    %13 = arith.cmpi sgt, %3, %c3_i32 : i32
    %14 = arith.extui %13 : i1 to i32
    %c0_i32_4 = arith.constant 0 : i32
    %15 = arith.cmpi ne, %14, %c0_i32_4 : i32
    scf.if %15 {
      %c3_i32_21 = arith.constant 3 : i32
      %36 = arith.addi %0, %c3_i32_21 : i32
      %37 = arith.index_cast %36 : i32 to index
      %38 = memref.load %arg2[%37] : memref<256xi32, #tpu.memory_space<smem>>
      %c3_i32_22 = arith.constant 3 : i32
      %c0_i32_23 = arith.constant 0 : i32
      %39 = tpu.memref_slice %arg3[%38, %c0_i32_23] : memref<64x256xf32, #tpu.memory_space<any>> -> memref<1x256xf32, #tpu.memory_space<any>>
      %c3_i32_24 = arith.constant 3 : i32
      %c0_i32_25 = arith.constant 0 : i32
      %40 = tpu.memref_slice %arg5[%c3_i32_24, %c0_i32_25] : memref<256x256xf32, #tpu.memory_space<vmem>> -> memref<1x256xf32, #tpu.memory_space<vmem>>
      %41 = tpu.memref_slice %arg6[%c3_i32_22] : memref<8x!tpu.dma_semaphore, #tpu.memory_space<semaphore_mem>> -> memref<1x!tpu.dma_semaphore, #tpu.memory_space<semaphore_mem>>
      %42 = tpu.memref_squeeze %41 : memref<1x!tpu.dma_semaphore, #tpu.memory_space<semaphore_mem>> -> memref<!tpu.dma_semaphore, #tpu.memory_space<semaphore_mem>>
      tpu.enqueue_dma source(%39 : memref<1x256xf32, #tpu.memory_space<any>>) target(%40 : memref<1x256xf32, #tpu.memory_space<vmem>>) target_semaphore(%42 : memref<!tpu.dma_semaphore, #tpu.memory_space<semaphore_mem>>)
    } else {
    }
    %c4_i32 = arith.constant 4 : i32
    %16 = arith.cmpi sgt, %3, %c4_i32 : i32
    %17 = arith.extui %16 : i1 to i32
    %c0_i32_5 = arith.constant 0 : i32
    %18 = arith.cmpi ne, %17, %c0_i32_5 : i32
    scf.if %18 {
      %c4_i32_21 = arith.constant 4 : i32
      %36 = arith.addi %0, %c4_i32_21 : i32
      %37 = arith.index_cast %36 : i32 to index
      %38 = memref.load %arg2[%37] : memref<256xi32, #tpu.memory_space<smem>>
      %c4_i32_22 = arith.constant 4 : i32
      %c0_i32_23 = arith.constant 0 : i32
      %39 = tpu.memref_slice %arg3[%38, %c0_i32_23] : memref<64x256xf32, #tpu.memory_space<any>> -> memref<1x256xf32, #tpu.memory_space<any>>
      %c4_i32_24 = arith.constant 4 : i32
      %c0_i32_25 = arith.constant 0 : i32
      %40 = tpu.memref_slice %arg5[%c4_i32_24, %c0_i32_25] : memref<256x256xf32, #tpu.memory_space<vmem>> -> memref<1x256xf32, #tpu.memory_space<vmem>>
      %41 = tpu.memref_slice %arg6[%c4_i32_22] : memref<8x!tpu.dma_semaphore, #tpu.memory_space<semaphore_mem>> -> memref<1x!tpu.dma_semaphore, #tpu.memory_space<semaphore_mem>>
      %42 = tpu.memref_squeeze %41 : memref<1x!tpu.dma_semaphore, #tpu.memory_space<semaphore_mem>> -> memref<!tpu.dma_semaphore, #tpu.memory_space<semaphore_mem>>
      tpu.enqueue_dma source(%39 : memref<1x256xf32, #tpu.memory_space<any>>) target(%40 : memref<1x256xf32, #tpu.memory_space<vmem>>) target_semaphore(%42 : memref<!tpu.dma_semaphore, #tpu.memory_space<semaphore_mem>>)
    } else {
    }
    %c5_i32 = arith.constant 5 : i32
    %19 = arith.cmpi sgt, %3, %c5_i32 : i32
    %20 = arith.extui %19 : i1 to i32
    %c0_i32_6 = arith.constant 0 : i32
    %21 = arith.cmpi ne, %20, %c0_i32_6 : i32
    scf.if %21 {
      %c5_i32_21 = arith.constant 5 : i32
      %36 = arith.addi %0, %c5_i32_21 : i32
      %37 = arith.index_cast %36 : i32 to index
      %38 = memref.load %arg2[%37] : memref<256xi32, #tpu.memory_space<smem>>
      %c5_i32_22 = arith.constant 5 : i32
      %c0_i32_23 = arith.constant 0 : i32
      %39 = tpu.memref_slice %arg3[%38, %c0_i32_23] : memref<64x256xf32, #tpu.memory_space<any>> -> memref<1x256xf32, #tpu.memory_space<any>>
      %c5_i32_24 = arith.constant 5 : i32
      %c0_i32_25 = arith.constant 0 : i32
      %40 = tpu.memref_slice %arg5[%c5_i32_24, %c0_i32_25] : memref<256x256xf32, #tpu.memory_space<vmem>> -> memref<1x256xf32, #tpu.memory_space<vmem>>
      %41 = tpu.memref_slice %arg6[%c5_i32_22] : memref<8x!tpu.dma_semaphore, #tpu.memory_space<semaphore_mem>> -> memref<1x!tpu.dma_semaphore, #tpu.memory_space<semaphore_mem>>
      %42 = tpu.memref_squeeze %41 : memref<1x!tpu.dma_semaphore, #tpu.memory_space<semaphore_mem>> -> memref<!tpu.dma_semaphore, #tpu.memory_space<semaphore_mem>>
      tpu.enqueue_dma source(%39 : memref<1x256xf32, #tpu.memory_space<any>>) target(%40 : memref<1x256xf32, #tpu.memory_space<vmem>>) target_semaphore(%42 : memref<!tpu.dma_semaphore, #tpu.memory_space<semaphore_mem>>)
    } else {
    }
    %c6_i32 = arith.constant 6 : i32
    %22 = arith.cmpi sgt, %3, %c6_i32 : i32
    %23 = arith.extui %22 : i1 to i32
    %c0_i32_7 = arith.constant 0 : i32
    %24 = arith.cmpi ne, %23, %c0_i32_7 : i32
    scf.if %24 {
      %c6_i32_21 = arith.constant 6 : i32
      %36 = arith.addi %0, %c6_i32_21 : i32
      %37 = arith.index_cast %36 : i32 to index
      %38 = memref.load %arg2[%37] : memref<256xi32, #tpu.memory_space<smem>>
      %c6_i32_22 = arith.constant 6 : i32
      %c0_i32_23 = arith.constant 0 : i32
      %39 = tpu.memref_slice %arg3[%38, %c0_i32_23] : memref<64x256xf32, #tpu.memory_space<any>> -> memref<1x256xf32, #tpu.memory_space<any>>
      %c6_i32_24 = arith.constant 6 : i32
      %c0_i32_25 = arith.constant 0 : i32
      %40 = tpu.memref_slice %arg5[%c6_i32_24, %c0_i32_25] : memref<256x256xf32, #tpu.memory_space<vmem>> -> memref<1x256xf32, #tpu.memory_space<vmem>>
      %41 = tpu.memref_slice %arg6[%c6_i32_22] : memref<8x!tpu.dma_semaphore, #tpu.memory_space<semaphore_mem>> -> memref<1x!tpu.dma_semaphore, #tpu.memory_space<semaphore_mem>>
      %42 = tpu.memref_squeeze %41 : memref<1x!tpu.dma_semaphore, #tpu.memory_space<semaphore_mem>> -> memref<!tpu.dma_semaphore, #tpu.memory_space<semaphore_mem>>
      tpu.enqueue_dma source(%39 : memref<1x256xf32, #tpu.memory_space<any>>) target(%40 : memref<1x256xf32, #tpu.memory_space<vmem>>) target_semaphore(%42 : memref<!tpu.dma_semaphore, #tpu.memory_space<semaphore_mem>>)
    } else {
    }
    %c7_i32 = arith.constant 7 : i32
    %25 = arith.cmpi sgt, %3, %c7_i32 : i32
    %26 = arith.extui %25 : i1 to i32
    %c0_i32_8 = arith.constant 0 : i32
    %27 = arith.cmpi ne, %26, %c0_i32_8 : i32
    scf.if %27 {
      %c7_i32_21 = arith.constant 7 : i32
      %36 = arith.addi %0, %c7_i32_21 : i32
      %37 = arith.index_cast %36 : i32 to index
      %38 = memref.load %arg2[%37] : memref<256xi32, #tpu.memory_space<smem>>
      %c7_i32_22 = arith.constant 7 : i32
      %c0_i32_23 = arith.constant 0 : i32
      %39 = tpu.memref_slice %arg3[%38, %c0_i32_23] : memref<64x256xf32, #tpu.memory_space<any>> -> memref<1x256xf32, #tpu.memory_space<any>>
      %c7_i32_24 = arith.constant 7 : i32
      %c0_i32_25 = arith.constant 0 : i32
      %40 = tpu.memref_slice %arg5[%c7_i32_24, %c0_i32_25] : memref<256x256xf32, #tpu.memory_space<vmem>> -> memref<1x256xf32, #tpu.memory_space<vmem>>
      %41 = tpu.memref_slice %arg6[%c7_i32_22] : memref<8x!tpu.dma_semaphore, #tpu.memory_space<semaphore_mem>> -> memref<1x!tpu.dma_semaphore, #tpu.memory_space<semaphore_mem>>
      %42 = tpu.memref_squeeze %41 : memref<1x!tpu.dma_semaphore, #tpu.memory_space<semaphore_mem>> -> memref<!tpu.dma_semaphore, #tpu.memory_space<semaphore_mem>>
      tpu.enqueue_dma source(%39 : memref<1x256xf32, #tpu.memory_space<any>>) target(%40 : memref<1x256xf32, #tpu.memory_space<vmem>>) target_semaphore(%42 : memref<!tpu.dma_semaphore, #tpu.memory_space<semaphore_mem>>)
    } else {
    }
    %c0_i32_9 = arith.constant 0 : i32
    %28 = arith.subi %3, %c0_i32_9 : i32
    %c1_i32_10 = arith.constant 1 : i32
    %c1_i32_11 = arith.constant 1 : i32
    %29 = arith.subi %c1_i32_10, %c1_i32_11 : i32
    %30 = arith.addi %28, %29 : i32
    %c1_i32_12 = arith.constant 1 : i32
    %31 = arith.divsi %30, %c1_i32_12 : i32
    %c1_i32_13 = arith.constant 1 : i32
    %c0_i32_14 = arith.constant 0 : i32
    %c0_i32_15 = arith.constant 0 : i32
    %32 = arith.subi %31, %c0_i32_15 : i32
    %33 = arith.addi %c0_i32_15, %32 : i32
    %c1_i32_16 = arith.constant 1 : i32
    scf.for %arg7 = %c0_i32_15 to %33 step %c1_i32_16  : i32 {
      %36 = arith.muli %arg7, %c1_i32_13 : i32
      %37 = arith.addi %c0_i32_14, %36 : i32
      %c8_i32 = arith.constant 8 : i32
      %c0_i32_21 = arith.constant 0 : i32
      %38 = arith.cmpi eq, %c8_i32, %c0_i32_21 : i32
      %c1_i32_22 = arith.constant 1 : i32
      %39 = arith.select %38, %c1_i32_22, %c8_i32 : i32
      %40 = arith.remsi %37, %39 : i32
      %c0_i32_23 = arith.constant 0 : i32
      %41 = arith.cmpi ne, %40, %c0_i32_23 : i32
      %c0_i32_24 = arith.constant 0 : i32
      %42 = arith.cmpi slt, %40, %c0_i32_24 : i32
      %c0_i32_25 = arith.constant 0 : i32
      %43 = arith.cmpi slt, %39, %c0_i32_25 : i32
      %44 = arith.xori %42, %43 : i1
      %45 = arith.andi %44, %41 : i1
      %46 = arith.addi %40, %39 : i32
      %47 = arith.select %45, %46, %40 : i32
      %c0_i32_26 = arith.constant 0 : i32
      %c0_i32_27 = arith.constant 0 : i32
      %48 = tpu.memref_slice %arg3[%c0_i32_26, %c0_i32_27] : memref<64x256xf32, #tpu.memory_space<any>> -> memref<1x256xf32, #tpu.memory_space<any>>
      %c0_i32_28 = arith.constant 0 : i32
      %c0_i32_29 = arith.constant 0 : i32
      %49 = tpu.memref_slice %arg5[%c0_i32_28, %c0_i32_29] : memref<256x256xf32, #tpu.memory_space<vmem>> -> memref<1x256xf32, #tpu.memory_space<vmem>>
      %50 = tpu.memref_slice %arg6[%47] : memref<8x!tpu.dma_semaphore, #tpu.memory_space<semaphore_mem>> -> memref<1x!tpu.dma_semaphore, #tpu.memory_space<semaphore_mem>>
      %51 = tpu.memref_squeeze %50 : memref<1x!tpu.dma_semaphore, #tpu.memory_space<semaphore_mem>> -> memref<!tpu.dma_semaphore, #tpu.memory_space<semaphore_mem>>
      tpu.wait_dma2 semaphore(%51 : memref<!tpu.dma_semaphore, #tpu.memory_space<semaphore_mem>>) src(%48 : memref<1x256xf32, #tpu.memory_space<any>>) dst(%49 : memref<1x256xf32, #tpu.memory_space<vmem>>)
      %c8_i32_30 = arith.constant 8 : i32
      %52 = arith.addi %37, %c8_i32_30 : i32
      %53 = arith.cmpi slt, %52, %3 : i32
      %54 = arith.extui %53 : i1 to i32
      %c0_i32_31 = arith.constant 0 : i32
      %55 = arith.cmpi ne, %54, %c0_i32_31 : i32
      scf.if %55 {
        %c8_i32_32 = arith.constant 8 : i32
        %56 = arith.addi %37, %c8_i32_32 : i32
        %57 = arith.addi %0, %56 : i32
        %58 = arith.index_cast %57 : i32 to index
        %59 = memref.load %arg2[%58] : memref<256xi32, #tpu.memory_space<smem>>
        %c8_i32_33 = arith.constant 8 : i32
        %c0_i32_34 = arith.constant 0 : i32
        %60 = arith.cmpi eq, %c8_i32_33, %c0_i32_34 : i32
        %c1_i32_35 = arith.constant 1 : i32
        %61 = arith.select %60, %c1_i32_35, %c8_i32_33 : i32
        %62 = arith.remsi %56, %61 : i32
        %c0_i32_36 = arith.constant 0 : i32
        %63 = arith.cmpi ne, %62, %c0_i32_36 : i32
        %c0_i32_37 = arith.constant 0 : i32
        %64 = arith.cmpi slt, %62, %c0_i32_37 : i32
        %c0_i32_38 = arith.constant 0 : i32
        %65 = arith.cmpi slt, %61, %c0_i32_38 : i32
        %66 = arith.xori %64, %65 : i1
        %67 = arith.andi %66, %63 : i1
        %68 = arith.addi %62, %61 : i32
        %69 = arith.select %67, %68, %62 : i32
        %c0_i32_39 = arith.constant 0 : i32
        %70 = tpu.memref_slice %arg3[%59, %c0_i32_39] : memref<64x256xf32, #tpu.memory_space<any>> -> memref<1x256xf32, #tpu.memory_space<any>>
        %c0_i32_40 = arith.constant 0 : i32
        %71 = tpu.memref_slice %arg5[%56, %c0_i32_40] : memref<256x256xf32, #tpu.memory_space<vmem>> -> memref<1x256xf32, #tpu.memory_space<vmem>>
        %72 = tpu.memref_slice %arg6[%69] : memref<8x!tpu.dma_semaphore, #tpu.memory_space<semaphore_mem>> -> memref<1x!tpu.dma_semaphore, #tpu.memory_space<semaphore_mem>>
        %73 = tpu.memref_squeeze %72 : memref<1x!tpu.dma_semaphore, #tpu.memory_space<semaphore_mem>> -> memref<!tpu.dma_semaphore, #tpu.memory_space<semaphore_mem>>
        tpu.enqueue_dma source(%70 : memref<1x256xf32, #tpu.memory_space<any>>) target(%71 : memref<1x256xf32, #tpu.memory_space<vmem>>) target_semaphore(%73 : memref<!tpu.dma_semaphore, #tpu.memory_space<semaphore_mem>>)
      } else {
      }
    }
    %c0_17 = arith.constant 0 : index
    %c0_18 = arith.constant 0 : index
    %34 = vector.load %arg5[%c0_17, %c0_18] : memref<256x256xf32, #tpu.memory_space<vmem>>, vector<256x256xf32>
    %c0_19 = arith.constant 0 : index
    %c0_20 = arith.constant 0 : index
    %35 = vector.load %arg4[%c0_19, %c0_20] : memref<256x256xf32, #tpu.memory_space<vmem>>, vector<256x256xf32>
    tpu.vector_store %arg4[%c0_19, %c0_20], %34 {strides = array<i32>} : memref<256x256xf32, #tpu.memory_space<vmem>>, vector<256x256xf32>,
    return
  }
  func.func @transform_1(%arg0: i32, %arg1: memref<1xi32, #tpu.memory_space<smem>>, %arg2: memref<256xi32, #tpu.memory_space<smem>>) -> (i32, i32) {
    %c0_i32 = arith.constant 0 : i32
    %c0_i32_0 = arith.constant 0 : i32
    return %arg0, %c0_i32 : i32, i32
  }
}

</mosaic_0001>

<bundles_post_ra>
// kernel: _lambda_.3
= control target key start
LH: loop header
LB: loop body
LE: loop exit
PB: predicated region body
PF: predicated region fallthrough
CT: control target
= control target key end

     0   :  { %s1084_s0 = inlined_call_operand.<no memory space> [shape: s32[1], index: 0, kind: input, shape index: {}]   ;;  %s1085_s1 = inlined_call_operand.vmem [shape: s32[256], index: 1, kind: input, shape index: {}]   ;;  %s1086_s2 = inlined_call_operand.vmem [shape: f32[16,128], index: 2, kind: input, shape index: {}]   ;;  %s1087_s3 = inlined_call_operand.vmem [shape: f32[256,128], index: 3, kind: output, shape index: {}]  }
   0x1   :  { %s9_s14 = sshll.u32 %s1085_s1, 4  ;;  %s10_s14 = int_to_ptr.vmem [resolvable:$true] %s9_s14 }
   0x2   :  { %s863_s15 = scalar_lea.vmem %s10_s14, 32  ;;  %p868_p1 = scmp.lt.s32.totalorder %s10_s14, %s10_s14 }
   0x3   :  { %p864_p0 = scmp.ne.s32.totalorder %s10_s14, %s863_s15  ;;  %p869_p2 = scmp.lt.s32.totalorder %s863_s15, %s863_s15 }
   0x5   :  { %p870_p3 = por %p869_p2, %p868_p1 }
   0x7   :  { %p871_p4 = pnand %p870_p3, %p864_p0 }
   0x9   :  { %874 = shalt.err (!%p871_p4)  }
   0xa   :  { %s887_s16 = smov [#allocation6]  }
   0xb   :  { %12 = dma.vmem_to_smem %s10_s14, 32, %s887_s16, [#allocation4] }
   0xc   :  { %879 = dma.done.wait [#allocation4], 32 }
   0xd   :  { %880 = vsyncadd [#allocation4], 4294967264 }
   0xe   :  { %14 = sfence }
   0xf   :  { %p18_p5 = scmp.lt.s32.totalorder %s1084_s0, 256  ;;  %p786_p6 = scmp.gt.s32.totalorder %s1084_s0, 0 }
  0x10   :  { %s24_s23 = sld [smem:[#allocation6]] (%p786_p6) }
  0x11   :  { %s920_s22 = scalar_select %p18_p5, %s1084_s0, 256 }
  0x12   :  { %23 = sbr.rel (!%p786_p6) target bundleno = 26 (0x1a), region = 5 }
  0x16   :  { %s25_s26 = scalar_lea.vmem (%p786_p6), %s1086_s2, %s24_s23 }
  0x17   :  { %v44_v0 = vld [vmem:[%s25_s26] sm:$0x1] }
  0x18   :  { %45 = vst [vmem:[#allocation2] sm:$0x1] %v44_v0 }
  0x19   :  { %71 = vsyncadd [#allocation3], 16 }
  0x1a PF:  { %p790_p7 = scmp.gt.s32.totalorder %s1084_s0, 1 }
  0x1b   :  { %s794_s29 = sld [smem:[#allocation6 + $0x1]] (%p790_p7) }
  0x1c   :  { %75 = sbr.rel (!%p790_p7) target bundleno = 37 (0x25), region = 39 }
  0x21   :  { %s78_s5 = scalar_lea.vmem %s1086_s2, %s794_s29 }
  0x22   :  { %v99_v1 = vld [vmem:[%s78_s5] sm:$0x1] }
  0x23   :  { %100 = vst [vmem:[#allocation2 + $0x1] sm:$0x1] %v99_v1 }
  0x24   :  { %126 = vsyncadd [#allocation3 + $0x1], 16 }
  0x25 PF:  { %p795_p8 = scmp.gt.s32.totalorder %s1084_s0, 2 }
  0x26   :  { %s799_s8 = sld [smem:[#allocation6 + $0x2]] (%p795_p8) }
  0x27   :  { %130 = sbr.rel (!%p795_p8) target bundleno = 48 (0x30), region = 73 }
  0x2c   :  { %s133_s11 = scalar_lea.vmem %s1086_s2, %s799_s8 }
  0x2d   :  { %v154_v2 = vld [vmem:[%s133_s11] sm:$0x1] }
  0x2e   :  { %155 = vst [vmem:[#allocation2 + $0x2] sm:$0x1] %v154_v2 }
  0x2f   :  { %181 = vsyncadd [#allocation3 + $0x2], 16 }
  0x30 PF:  { %p800_p9 = scmp.gt.s32.totalorder %s1084_s0, 3 }
  0x31   :  { %s804_s14 = sld [smem:[#allocation6 + $0x3]] (%p800_p9) }
  0x32   :  { %185 = sbr.rel (!%p800_p9) target bundleno = 59 (0x3b), region = 107 }
  0x37   :  { %s188_s17 = scalar_lea.vmem %s1086_s2, %s804_s14 }
  0x38   :  { %v209_v3 = vld [vmem:[%s188_s17] sm:$0x1] }
  0x39   :  { %210 = vst [vmem:[#allocation2 + $0x3] sm:$0x1] %v209_v3 }
  0x3a   :  { %236 = vsyncadd [#allocation3 + $0x3], 16 }
  0x3b PF:  { %p805_p10 = scmp.gt.s32.totalorder %s1084_s0, 4 }
  0x3c   :  { %s809_s20 = sld [smem:[#allocation6 + $0x4]] (%p805_p10) }
  0x3d   :  { %240 = sbr.rel (!%p805_p10) target bundleno = 70 (0x46), region = 141 }
  0x42   :  { %s243_s23 = scalar_lea.vmem %s1086_s2, %s809_s20 }
  0x43   :  { %v264_v4 = vld [vmem:[%s243_s23] sm:$0x1] }
  0x44   :  { %265 = vst [vmem:[#allocation2 + $0x4] sm:$0x1] %v264_v4 }
  0x45   :  { %291 = vsyncadd [#allocation3 + $0x4], 16 }
  0x46 PF:  { %p810_p11 = scmp.gt.s32.totalorder %s1084_s0, 5 }
  0x47   :  { %s814_s26 = sld [smem:[#allocation6 + $0x5]] (%p810_p11) }
  0x48   :  { %295 = sbr.rel (!%p810_p11) target bundleno = 81 (0x51), region = 175 }
  0x4d   :  { %s298_s29 = scalar_lea.vmem %s1086_s2, %s814_s26 }
  0x4e   :  { %v319_v5 = vld [vmem:[%s298_s29] sm:$0x1] }
  0x4f   :  { %320 = vst [vmem:[#allocation2 + $0x5] sm:$0x1] %v319_v5 }
  0x50   :  { %346 = vsyncadd [#allocation3 + $0x5], 16 }
  0x51 PF:  { %p815_p12 = scmp.gt.s32.totalorder %s1084_s0, 6 }
  0x52   :  { %s819_s5 = sld [smem:[#allocation6 + $0x6]] (%p815_p12) }
  0x53   :  { %350 = sbr.rel (!%p815_p12) target bundleno = 92 (0x5c), region = 209 }
  0x58   :  { %s353_s8 = scalar_lea.vmem %s1086_s2, %s819_s5 }
  0x59   :  { %v374_v6 = vld [vmem:[%s353_s8] sm:$0x1] }
  0x5a   :  { %375 = vst [vmem:[#allocation2 + $0x6] sm:$0x1] %v374_v6 }
  0x5b   :  { %401 = vsyncadd [#allocation3 + $0x6], 16 }
  0x5c PF:  { %p820_p13 = scmp.gt.s32.totalorder %s1084_s0, 7 }
  0x5d   :  { %s824_s11 = sld [smem:[#allocation6 + $0x7]] (%p820_p13) }
  0x5e   :  { %405 = sbr.rel (!%p820_p13) target bundleno = 103 (0x67), region = 243 }
  0x63   :  { %s408_s14 = scalar_lea.vmem %s1086_s2, %s824_s11 }
  0x64   :  { %v429_v7 = vld [vmem:[%s408_s14] sm:$0x1] }
  0x65   :  { %430 = vst [vmem:[#allocation2 + $0x7] sm:$0x1] %v429_v7 }
  0x66   :  { %456 = vsyncadd [#allocation3 + $0x7], 16 }
  0x67 PF:  { %p851_p0 = scmp.le.s32.totalorder %s1084_s0, 0 }
  0x68   :  { %s970_s17 = smov (!%p851_p0), 0  }
  0x69   :  { %783 = sbr.rel (%p851_p0) target bundleno = 142 (0x8e), region = 450 }
  0x6e LB: > { %p463_p1 = scmp.lt.s32.totalorder %s885_s17, 0  ;;  %s464_s18 = ssub.s32 0, %s885_s17  ;;  %s885_s17 = sphi %s970_s17, %s460_s17  }
  0x6f   : > { %s826_s19 = smin.u32 %s885_s17, %s464_s18 }
  0x70   : > { %s466_s20 = sand.u32 7, %s826_s19  }
  0x71   : > { %s467_s1 = ssub.s32 0, %s466_s20 }
  0x72   : > { %s1089_s1 = smov (!%p463_p1, %s467_s1), %s466_s20 }
  0x73   : > { %p828_p2 = scmp.lt.s32.totalorder %s1089_s1, 0  ;;  %s473_s21 = sadd.s32 8, %s1089_s1 }
  0x75   : > { %s1091_s21 = smov (!%p828_p2, %s473_s21), %s1089_s1 }
  0x76   : > { %s475_s0 = scalar_lea.sflag [#allocation3], %s1091_s21 }
  0x77   : > { %881 = dma.done.wait %s475_s0, 16 }
  0x78   : > { %882 = vsyncadd %s475_s0, 4294967280  ;;  %s479_s23 = sadd.s32 8, %s885_s17 }
  0x79   : > { %p829_p3 = scmp.ge.s32.totalorder %s479_s23, %s920_s22 }
  0x7a   : > { %s485_s24 = sld [smem:[#allocation6 + %s479_s23]] (!%p829_p3)  ;;  %p486_p4 = scmp.lt.s32.totalorder (!%p829_p3), %s479_s23, 0 }
  0x7b   : > { %483 = sbr.rel (%p829_p3) target bundleno = 134 (0x86), region = 284  ;;  %s487_s25 = ssub.s32 (!%p829_p3), 0, %s479_s23 }
  0x7c   : > { %s830_s26 = smin.u32 (!%p829_p3), %s487_s25, %s479_s23  ;;  %s703_s6 = scalar_lea.vmem (!%p829_p3), [#allocation2], %s885_s17 }
  0x7d   : > { %s489_s27 = sand.u32 (!%p829_p3), 7, %s830_s26  }
  0x7e   : > { %s490_s28 = ssub.s32 (!%p829_p3), 0, %s489_s27 }
  0x80   : > { %s1093_s28 = smov (!%p486_p4, %s490_s28), %s489_s27  ;;  %s498_s4 = scalar_lea.vmem %s1086_s2, %s485_s24 }
  0x81   : > { %p832_p5 = scmp.lt.s32.totalorder %s1093_s28, 0  ;;  %s496_s5 = sadd.s32 8, %s1093_s28  ;;  %v519_v8 = vld [vmem:[%s498_s4] sm:$0x1] }
  0x82   : > { %834 = vst [vmem:[%s703_s6 + $0x8] sm:$0x1] %v519_v8 }
  0x83   : > { %s1095_s5 = smov (!%p832_p5, %s496_s5), %s1093_s28 }
  0x84   : > { %s500_s7 = scalar_lea.sflag [#allocation3], %s1095_s5 }
  0x85   : > { %546 = vsyncadd %s500_s7, 16 }
  0x86 PF: > { %s460_s17 = sadd.s32 1, %s885_s17  }
  0x87   : > { %p459_p6 = scmp.ge.s32.totalorder %s460_s17, %s920_s22 }
  0x89   :  { %462 = sbr.rel (!%p459_p6) target bundleno = 110 (0x6e), region = 456 }
  0x8e PF:  { %v547_v9 = vld [vmem:[#allocation2] sm:$0xff]  ;;  %v548_v10 = vld [vmem:[#allocation2 + $0x8] sm:$0xff]  ;;  %v549_v11 = vld [vmem:[#allocation2 + $0x10] sm:$0xff] }
  0x8f   :  { %579 = vst [vmem:[%s1087_s3] sm:$0xff] %v547_v9  ;;  %580 = vst [vmem:[%s1087_s3 + $0x8] sm:$0xff] %v548_v10  ;;  %v550_v12 = vld [vmem:[#allocation2 + $0x18] sm:$0xff]  ;;  %v551_v13 = vld [vmem:[#allocation2 + $0x20] sm:$0xff] }
  0x90   :  { %581 = vst [vmem:[%s1087_s3 + $0x10] sm:$0xff] %v549_v11  ;;  %v552_v14 = vld [vmem:[#allocation2 + $0x28] sm:$0xff]  ;;  %582 = vst [vmem:[%s1087_s3 + $0x18] sm:$0xff] %v550_v12  ;;  %v553_v15 = vld [vmem:[#allocation2 + $0x30] sm:$0xff] }
  0x91   :  { %583 = vst [vmem:[%s1087_s3 + $0x20] sm:$0xff] %v551_v13  ;;  %584 = vst [vmem:[%s1087_s3 + $0x28] sm:$0xff] %v552_v14  ;;  %v554_v16 = vld [vmem:[#allocation2 + $0x38] sm:$0xff]  ;;  %v555_v17 = vld [vmem:[#allocation2 + $0x40] sm:$0xff] }
  0x92   :  { %585 = vst [vmem:[%s1087_s3 + $0x30] sm:$0xff] %v553_v15  ;;  %586 = vst [vmem:[%s1087_s3 + $0x38] sm:$0xff] %v554_v16  ;;  %v556_v18 = vld [vmem:[#allocation2 + $0x48] sm:$0xff]  ;;  %v557_v19 = vld [vmem:[#allocation2 + $0x50] sm:$0xff] }
  0x93   :  { %587 = vst [vmem:[%s1087_s3 + $0x40] sm:$0xff] %v555_v17  ;;  %v558_v20 = vld [vmem:[#allocation2 + $0x58] sm:$0xff]  ;;  %588 = vst [vmem:[%s1087_s3 + $0x48] sm:$0xff] %v556_v18  ;;  %v559_v21 = vld [vmem:[#allocation2 + $0x60] sm:$0xff] }
  0x94   :  { %589 = vst [vmem:[%s1087_s3 + $0x50] sm:$0xff] %v557_v19  ;;  %590 = vst [vmem:[%s1087_s3 + $0x58] sm:$0xff] %v558_v20  ;;  %v560_v22 = vld [vmem:[#allocation2 + $0x68] sm:$0xff]  ;;  %v561_v23 = vld [vmem:[#allocation2 + $0x70] sm:$0xff] }
  0x95   :  { %591 = vst [vmem:[%s1087_s3 + $0x60] sm:$0xff] %v559_v21  ;;  %592 = vst [vmem:[%s1087_s3 + $0x68] sm:$0xff] %v560_v22  ;;  %v562_v24 = vld [vmem:[#allocation2 + $0x78] sm:$0xff]  ;;  %v563_v25 = vld [vmem:[#allocation2 + $0x80] sm:$0xff] }
  0x96   :  { %593 = vst [vmem:[%s1087_s3 + $0x70] sm:$0xff] %v561_v23  ;;  %v564_v26 = vld [vmem:[#allocation2 + $0x88] sm:$0xff]  ;;  %594 = vst [vmem:[%s1087_s3 + $0x78] sm:$0xff] %v562_v24  ;;  %v565_v27 = vld [vmem:[#allocation2 + $0x90] sm:$0xff] }
  0x97   :  { %595 = vst [vmem:[%s1087_s3 + $0x80] sm:$0xff] %v563_v25  ;;  %596 = vst [vmem:[%s1087_s3 + $0x88] sm:$0xff] %v564_v26  ;;  %v566_v28 = vld [vmem:[#allocation2 + $0x98] sm:$0xff]  ;;  %v567_v29 = vld [vmem:[#allocation2 + $0xa0] sm:$0xff] }
  0x98   :  { %597 = vst [vmem:[%s1087_s3 + $0x90] sm:$0xff] %v565_v27  ;;  %598 = vst [vmem:[%s1087_s3 + $0x98] sm:$0xff] %v566_v28  ;;  %v568_v30 = vld [vmem:[#allocation2 + $0xa8] sm:$0xff]  ;;  %v569_v31 = vld [vmem:[#allocation2 + $0xb0] sm:$0xff] }
  0x99   :  { %599 = vst [vmem:[%s1087_s3 + $0xa0] sm:$0xff] %v567_v29  ;;  %v570_v32 = vld [vmem:[#allocation2 + $0xb8] sm:$0xff]  ;;  %600 = vst [vmem:[%s1087_s3 + $0xa8] sm:$0xff] %v568_v30  ;;  %v571_v33 = vld [vmem:[#allocation2 + $0xc0] sm:$0xff] }
  0x9a   :  { %601 = vst [vmem:[%s1087_s3 + $0xb0] sm:$0xff] %v569_v31  ;;  %602 = vst [vmem:[%s1087_s3 + $0xb8] sm:$0xff] %v570_v32  ;;  %v572_v34 = vld [vmem:[#allocation2 + $0xc8] sm:$0xff]  ;;  %v573_v35 = vld [vmem:[#allocation2 + $0xd0] sm:$0xff] }
  0x9b   :  { %603 = vst [vmem:[%s1087_s3 + $0xc0] sm:$0xff] %v571_v33  ;;  %604 = vst [vmem:[%s1087_s3 + $0xc8] sm:$0xff] %v572_v34  ;;  %v574_v36 = vld [vmem:[#allocation2 + $0xd8] sm:$0xff]  ;;  %v575_v37 = vld [vmem:[#allocation2 + $0xe0] sm:$0xff] }
  0x9c   :  { %605 = vst [vmem:[%s1087_s3 + $0xd0] sm:$0xff] %v573_v35  ;;  %v576_v38 = vld [vmem:[#allocation2 + $0xe8] sm:$0xff]  ;;  %606 = vst [vmem:[%s1087_s3 + $0xd8] sm:$0xff] %v574_v36  ;;  %v577_v39 = vld [vmem:[#allocation2 + $0xf0] sm:$0xff] }
  0x9d   :  { %607 = vst [vmem:[%s1087_s3 + $0xe0] sm:$0xff] %v575_v37  ;;  %608 = vst [vmem:[%s1087_s3 + $0xe8] sm:$0xff] %v576_v38  ;;  %v578_v40 = vld [vmem:[#allocation2 + $0xf8] sm:$0xff] }
  0x9e   :  { %609 = vst [vmem:[%s1087_s3 + $0xf0] sm:$0xff] %v577_v39  ;;  %610 = vst [vmem:[%s1087_s3 + $0xf8] sm:$0xff] %v578_v40 }
  0x9f   :  { %615 = vsyncmov [#allocation3] }
  0xa2   :  { %s616_s12 = vpop.sfrf %615 }
  0xa3   :  { %p835_p7 = scmp.ne.s32.totalorder %s616_s12, 0 }
  0xa5   :  { %620 = shalt.err (%p835_p7)  }
  0xa6   :  { %622 = vsyncmov [#allocation3 + $0x1] }
  0xa9   :  { %s623_s13 = vpop.sfrf %622 }
  0xaa   :  { %p836_p8 = scmp.ne.s32.totalorder %s623_s13, 0 }
  0xac   :  { %627 = shalt.err (%p836_p8)  }
  0xad   :  { %629 = vsyncmov [#allocation3 + $0x2] }
  0xb0   :  { %s630_s14 = vpop.sfrf %629 }
  0xb1   :  { %p837_p9 = scmp.ne.s32.totalorder %s630_s14, 0 }
  0xb3   :  { %634 = shalt.err (%p837_p9)  }
  0xb4   :  { %636 = vsyncmov [#allocation3 + $0x3] }
  0xb7   :  { %s637_s2 = vpop.sfrf %636 }
  0xb8   :  { %p838_p10 = scmp.ne.s32.totalorder %s637_s2, 0 }
  0xba   :  { %641 = shalt.err (%p838_p10)  }
  0xbb   :  { %643 = vsyncmov [#allocation3 + $0x4] }
  0xbe   :  { %s644_s22 = vpop.sfrf %643 }
  0xbf   :  { %p839_p11 = scmp.ne.s32.totalorder %s644_s22, 0 }
  0xc1   :  { %648 = shalt.err (%p839_p11)  }
  0xc2   :  { %650 = vsyncmov [#allocation3 + $0x5] }
  0xc5   :  { %s651_s3 = vpop.sfrf %650 }
  0xc6   :  { %p840_p12 = scmp.ne.s32.totalorder %s651_s3, 0 }
  0xc8   :  { %655 = shalt.err (%p840_p12)  }
  0xc9   :  { %657 = vsyncmov [#allocation3 + $0x6] }
  0xcc   :  { %s658_s15 = vpop.sfrf %657 }
  0xcd   :  { %p841_p13 = scmp.ne.s32.totalorder %s658_s15, 0 }
  0xcf   :  { %662 = shalt.err (%p841_p13)  }
  0xd0   :  { %664 = vsyncmov [#allocation3 + $0x7] }
  0xd3   :  { %s665_s16 = vpop.sfrf %664 }
  0xd4   :  { %p842_p0 = scmp.ne.s32.totalorder %s665_s16, 0 }
  0xd6   :  { %669 = shalt.err (%p842_p0)  }

// kernel: _lambda_.2
= control target key start
LH: loop header
LB: loop body
LE: loop exit
PB: predicated region body
PF: predicated region fallthrough
CT: control target
= control target key end

     0   :  { %s1345_s0 = inlined_call_operand.<no memory space> [shape: s32[1], index: 0, kind: input, shape index: {}]   ;;  %s1346_s1 = inlined_call_operand.vmem [shape: s32[256], index: 1, kind: input, shape index: {}]   ;;  %s1347_s2 = inlined_call_operand.vmem [shape: f32[64,256], index: 2, kind: input, shape index: {}]   ;;  %s1348_s3 = inlined_call_operand.vmem [shape: f32[256,256], index: 3, kind: output, shape index: {}]  }
   0x1   :  { %s9_s14 = sshll.u32 %s1346_s1, 4  ;;  %s10_s14 = int_to_ptr.vmem [resolvable:$true] %s9_s14 }
   0x2   :  { %s1029_s15 = scalar_lea.vmem %s10_s14, 32  ;;  %p1034_p1 = scmp.lt.s32.totalorder %s10_s14, %s10_s14 }
   0x3   :  { %p1030_p0 = scmp.ne.s32.totalorder %s10_s14, %s1029_s15  ;;  %p1035_p2 = scmp.lt.s32.totalorder %s1029_s15, %s1029_s15 }
   0x5   :  { %p1036_p3 = por %p1035_p2, %p1034_p1 }
   0x7   :  { %p1037_p4 = pnand %p1036_p3, %p1030_p0 }
   0x9   :  { %1040 = shalt.err (!%p1037_p4)  }
   0xa   :  { %s1053_s16 = smov [#allocation6]  }
   0xb   :  { %12 = dma.vmem_to_smem %s10_s14, 32, %s1053_s16, [#allocation4] }
   0xc   :  { %1045 = dma.done.wait [#allocation4], 32 }
   0xd   :  { %1046 = vsyncadd [#allocation4], 4294967264 }
   0xe   :  { %14 = sfence }
   0xf   :  { %p18_p5 = scmp.lt.s32.totalorder %s1345_s0, 256  ;;  %p944_p6 = scmp.gt.s32.totalorder %s1345_s0, 0 }
  0x10   :  { %s24_s23 = sld [smem:[#allocation6]] (%p944_p6) }
  0x11   :  { %s1086_s22 = scalar_select %p18_p5, %s1345_s0, 256 }
  0x12   :  { %23 = sbr.rel (!%p944_p6) target bundleno = 29 (0x1d), region = 5 }
  0x16   :  { %s25_s24 = sshrl.u32 (%p944_p6), %s24_s23, 3  ;;  %s26_s25 = sand.u32 (%p944_p6), 7, %s24_s23  }
  0x17   :  { %s948_s26 = sshll.u32 %s25_s24, 4 }
  0x18   :  { %s28_s27 = sadd.s32 %s948_s26, %s26_s25 }
  0x19   :  { %s29_s30 = scalar_lea.vmem %s1347_s2, %s28_s27 }
  0x1a   :  { %v48_v0 = vld [vmem:[%s29_s30] sm:$0x1]  ;;  %v50_v1 = vld [vmem:[%s29_s30 + $0x8] sm:$0x1] }
  0x1b   :  { %49 = vst [vmem:[#allocation2] sm:$0x1] %v48_v0  ;;  %51 = vst [vmem:[#allocation2 + $0x8] sm:$0x1] %v50_v1 }
  0x1c   :  { %79 = vsyncadd [#allocation3], 32 }
  0x1d PF:  { %p949_p7 = scmp.gt.s32.totalorder %s1345_s0, 1 }
  0x1e   :  { %s953_s6 = sld [smem:[#allocation6 + $0x1]] (%p949_p7) }
  0x1f   :  { %83 = sbr.rel (!%p949_p7) target bundleno = 43 (0x2b), region = 39 }
  0x24   :  { %s86_s7 = sshrl.u32 %s953_s6, 3  ;;  %s87_s8 = sand.u32 7, %s953_s6  }
  0x25   :  { %s954_s9 = sshll.u32 %s86_s7, 4 }
  0x26   :  { %s89_s10 = sadd.s32 %s954_s9, %s87_s8 }
  0x27   :  { %s90_s13 = scalar_lea.vmem %s1347_s2, %s89_s10 }
  0x28   :  { %v111_v2 = vld [vmem:[%s90_s13] sm:$0x1]  ;;  %v113_v3 = vld [vmem:[%s90_s13 + $0x8] sm:$0x1] }
  0x29   :  { %112 = vst [vmem:[#allocation2 + $0x1] sm:$0x1] %v111_v2  ;;  %114 = vst [vmem:[#allocation2 + $0x9] sm:$0x1] %v113_v3 }
  0x2a   :  { %142 = vsyncadd [#allocation3 + $0x1], 32 }
  0x2b PF:  { %p955_p8 = scmp.gt.s32.totalorder %s1345_s0, 2 }
  0x2c   :  { %s959_s16 = sld [smem:[#allocation6 + $0x2]] (%p955_p8) }
  0x2d   :  { %146 = sbr.rel (!%p955_p8) target bundleno = 57 (0x39), region = 73 }
  0x32   :  { %s149_s17 = sshrl.u32 %s959_s16, 3  ;;  %s150_s18 = sand.u32 7, %s959_s16  }
  0x33   :  { %s960_s19 = sshll.u32 %s149_s17, 4 }
  0x34   :  { %s152_s20 = sadd.s32 %s960_s19, %s150_s18 }
  0x35   :  { %s153_s23 = scalar_lea.vmem %s1347_s2, %s152_s20 }
  0x36   :  { %v174_v4 = vld [vmem:[%s153_s23] sm:$0x1]  ;;  %v176_v5 = vld [vmem:[%s153_s23 + $0x8] sm:$0x1] }
  0x37   :  { %175 = vst [vmem:[#allocation2 + $0x2] sm:$0x1] %v174_v4  ;;  %177 = vst [vmem:[#allocation2 + $0xa] sm:$0x1] %v176_v5 }
  0x38   :  { %205 = vsyncadd [#allocation3 + $0x2], 32 }
  0x39 PF:  { %p961_p9 = scmp.gt.s32.totalorder %s1345_s0, 3 }
  0x3a   :  { %s965_s26 = sld [smem:[#allocation6 + $0x3]] (%p961_p9) }
  0x3b   :  { %209 = sbr.rel (!%p961_p9) target bundleno = 71 (0x47), region = 107 }
  0x40   :  { %s212_s27 = sshrl.u32 %s965_s26, 3  ;;  %s213_s28 = sand.u32 7, %s965_s26  }
  0x41   :  { %s966_s29 = sshll.u32 %s212_s27, 4 }
  0x42   :  { %s215_s30 = sadd.s32 %s966_s29, %s213_s28 }
  0x43   :  { %s216_s6 = scalar_lea.vmem %s1347_s2, %s215_s30 }
  0x44   :  { %v237_v6 = vld [vmem:[%s216_s6] sm:$0x1]  ;;  %v239_v7 = vld [vmem:[%s216_s6 + $0x8] sm:$0x1] }
  0x45   :  { %238 = vst [vmem:[#allocation2 + $0x3] sm:$0x1] %v237_v6  ;;  %240 = vst [vmem:[#allocation2 + $0xb] sm:$0x1] %v239_v7 }
  0x46   :  { %268 = vsyncadd [#allocation3 + $0x3], 32 }
  0x47 PF:  { %p967_p10 = scmp.gt.s32.totalorder %s1345_s0, 4 }
  0x48   :  { %s971_s9 = sld [smem:[#allocation6 + $0x4]] (%p967_p10) }
  0x49   :  { %272 = sbr.rel (!%p967_p10) target bundleno = 85 (0x55), region = 141 }
  0x4e   :  { %s275_s10 = sshrl.u32 %s971_s9, 3  ;;  %s276_s11 = sand.u32 7, %s971_s9  }
  0x4f   :  { %s972_s12 = sshll.u32 %s275_s10, 4 }
  0x50   :  { %s278_s13 = sadd.s32 %s972_s12, %s276_s11 }
  0x51   :  { %s279_s16 = scalar_lea.vmem %s1347_s2, %s278_s13 }
  0x52   :  { %v300_v8 = vld [vmem:[%s279_s16] sm:$0x1]  ;;  %v302_v9 = vld [vmem:[%s279_s16 + $0x8] sm:$0x1] }
  0x53   :  { %301 = vst [vmem:[#allocation2 + $0x4] sm:$0x1] %v300_v8  ;;  %303 = vst [vmem:[#allocation2 + $0xc] sm:$0x1] %v302_v9 }
  0x54   :  { %331 = vsyncadd [#allocation3 + $0x4], 32 }
  0x55 PF:  { %p973_p11 = scmp.gt.s32.totalorder %s1345_s0, 5 }
  0x56   :  { %s977_s19 = sld [smem:[#allocation6 + $0x5]] (%p973_p11) }
  0x57   :  { %335 = sbr.rel (!%p973_p11) target bundleno = 99 (0x63), region = 175 }
  0x5c   :  { %s338_s20 = sshrl.u32 %s977_s19, 3  ;;  %s339_s1 = sand.u32 7, %s977_s19  }
  0x5d   :  { %s978_s21 = sshll.u32 %s338_s20, 4 }
  0x5e   :  { %s341_s23 = sadd.s32 %s978_s21, %s339_s1 }
  0x5f   :  { %s342_s26 = scalar_lea.vmem %s1347_s2, %s341_s23 }
  0x60   :  { %v363_v10 = vld [vmem:[%s342_s26] sm:$0x1]  ;;  %v365_v11 = vld [vmem:[%s342_s26 + $0x8] sm:$0x1] }
  0x61   :  { %364 = vst [vmem:[#allocation2 + $0x5] sm:$0x1] %v363_v10  ;;  %366 = vst [vmem:[#allocation2 + $0xd] sm:$0x1] %v365_v11 }
  0x62   :  { %394 = vsyncadd [#allocation3 + $0x5], 32 }
  0x63 PF:  { %p979_p12 = scmp.gt.s32.totalorder %s1345_s0, 6 }
  0x64   :  { %s983_s29 = sld [smem:[#allocation6 + $0x6]] (%p979_p12) }
  0x65   :  { %398 = sbr.rel (!%p979_p12) target bundleno = 113 (0x71), region = 209 }
  0x6a   :  { %s401_s30 = sshrl.u32 %s983_s29, 3  ;;  %s402_s4 = sand.u32 7, %s983_s29  }
  0x6b   :  { %s984_s5 = sshll.u32 %s401_s30, 4 }
  0x6c   :  { %s404_s6 = sadd.s32 %s984_s5, %s402_s4 }
  0x6d   :  { %s405_s9 = scalar_lea.vmem %s1347_s2, %s404_s6 }
  0x6e   :  { %v426_v12 = vld [vmem:[%s405_s9] sm:$0x1]  ;;  %v428_v13 = vld [vmem:[%s405_s9 + $0x8] sm:$0x1] }
  0x6f   :  { %427 = vst [vmem:[#allocation2 + $0x6] sm:$0x1] %v426_v12  ;;  %429 = vst [vmem:[#allocation2 + $0xe] sm:$0x1] %v428_v13 }
  0x70   :  { %457 = vsyncadd [#allocation3 + $0x6], 32 }
  0x71 PF:  { %p985_p13 = scmp.gt.s32.totalorder %s1345_s0, 7 }
  0x72   :  { %s989_s12 = sld [smem:[#allocation6 + $0x7]] (%p985_p13) }
  0x73   :  { %461 = sbr.rel (!%p985_p13) target bundleno = 127 (0x7f), region = 243 }
  0x78   :  { %s464_s13 = sshrl.u32 %s989_s12, 3  ;;  %s465_s14 = sand.u32 7, %s989_s12  }
  0x79   :  { %s990_s15 = sshll.u32 %s464_s13, 4 }
  0x7a   :  { %s467_s16 = sadd.s32 %s990_s15, %s465_s14 }
  0x7b   :  { %s468_s19 = scalar_lea.vmem %s1347_s2, %s467_s16 }
  0x7c   :  { %v489_v14 = vld [vmem:[%s468_s19] sm:$0x1]  ;;  %v491_v15 = vld [vmem:[%s468_s19 + $0x8] sm:$0x1] }
  0x7d   :  { %490 = vst [vmem:[#allocation2 + $0x7] sm:$0x1] %v489_v14  ;;  %492 = vst [vmem:[#allocation2 + $0xf] sm:$0x1] %v491_v15 }
  0x7e   :  { %520 = vsyncadd [#allocation3 + $0x7], 32 }
  0x7f PF:  { %p1017_p0 = scmp.le.s32.totalorder %s1345_s0, 0 }
  0x80   :  { %s1136_s21 = smov (!%p1017_p0), 0  }
  0x81   :  { %941 = sbr.rel (%p1017_p0) target bundleno = 168 (0xa8), region = 450 }
  0x86 LB: > { %p527_p1 = scmp.lt.s32.totalorder %s1051_s21, 0  ;;  %s528_s23 = ssub.s32 0, %s1051_s21  ;;  %s1051_s21 = sphi %s1136_s21, %s524_s21  }
  0x87   : > { %s992_s24 = smin.u32 %s1051_s21, %s528_s23 }
  0x88   : > { %s530_s25 = sand.u32 7, %s992_s24  }
  0x89   : > { %s531_s26 = ssub.s32 0, %s530_s25 }
  0x8a   : > { %s1350_s26 = smov (!%p527_p1, %s531_s26), %s530_s25 }
  0x8b   : > { %p994_p2 = scmp.lt.s32.totalorder %s1350_s26, 0  ;;  %s537_s27 = sadd.s32 8, %s1350_s26 }
  0x8d   : > { %s1352_s27 = smov (!%p994_p2, %s537_s27), %s1350_s26 }
  0x8e   : > { %s539_s0 = scalar_lea.sflag [#allocation3], %s1352_s27 }
  0x8f   : > { %1047 = dma.done.wait %s539_s0, 32 }
  0x90   : > { %1048 = vsyncadd %s539_s0, 4294967264  ;;  %s543_s28 = sadd.s32 8, %s1051_s21 }
  0x91   : > { %p995_p3 = scmp.ge.s32.totalorder %s543_s28, %s1086_s22 }
  0x92   : > { %s549_s29 = sld [smem:[#allocation6 + %s543_s28]] (!%p995_p3)  ;;  %p550_p4 = scmp.lt.s32.totalorder (!%p995_p3), %s543_s28, 0 }
  0x93   : > { %547 = sbr.rel (%p995_p3) target bundleno = 160 (0xa0), region = 284  ;;  %s551_s30 = ssub.s32 (!%p995_p3), 0, %s543_s28 }
  0x94   : > { %s567_s4 = sshrl.u32 (!%p995_p3), %s543_s28, 3  ;;  %s996_s5 = smin.u32 (!%p995_p3), %s551_s30, %s543_s28 }
  0x95   : > { %s568_s6 = sand.u32 (!%p995_p3), 7, %s543_s28   ;;  %s553_s7 = sand.u32 (!%p995_p3), 7, %s996_s5  }
  0x96   : > { %s1000_s8 = sshll.u32 (!%p995_p3), %s567_s4, 4  ;;  %s554_s9 = ssub.s32 (!%p995_p3), 0, %s553_s7 }
  0x97   : > { %s570_s10 = sadd.s32 (!%p995_p3), %s1000_s8, %s568_s6 }
  0x98   : > { %s1354_s9 = smov (!%p550_p4, %s554_s9), %s553_s7  ;;  %s562_s11 = sshrl.u32 %s549_s29, 3 }
  0x99   : > { %s563_s12 = sand.u32 7, %s549_s29   ;;  %p998_p5 = scmp.lt.s32.totalorder %s1354_s9, 0 }
  0x9a   : > { %s560_s13 = sadd.s32 8, %s1354_s9  ;;  %s999_s14 = sshll.u32 %s562_s11, 4 }
  0x9b   : > { %s1356_s13 = smov (!%p998_p5, %s560_s13), %s1354_s9  ;;  %s565_s15 = sadd.s32 %s999_s14, %s563_s12 }
  0x9c   : > { %s566_s18 = scalar_lea.vmem %s1347_s2, %s565_s15  ;;  %s571_s19 = scalar_lea.vmem [#allocation2], %s570_s10 }
  0x9d   : > { %v591_v16 = vld [vmem:[%s566_s18] sm:$0x1]  ;;  %v593_v17 = vld [vmem:[%s566_s18 + $0x8] sm:$0x1]  ;;  %s572_s20 = scalar_lea.sflag [#allocation3], %s1356_s13 }
  0x9e   : > { %592 = vst [vmem:[%s571_s19] sm:$0x1] %v591_v16  ;;  %594 = vst [vmem:[%s571_s19 + $0x8] sm:$0x1] %v593_v17 }
  0x9f   : > { %622 = vsyncadd %s572_s20, 32 }
  0xa0 PF: > { %s524_s21 = sadd.s32 1, %s1051_s21  }
  0xa1   : > { %p523_p6 = scmp.ge.s32.totalorder %s524_s21, %s1086_s22 }
  0xa3   :  { %526 = sbr.rel (!%p523_p6) target bundleno = 134 (0x86), region = 456 }
  0xa8 PF:  { %v623_v18 = vld [vmem:[#allocation2] sm:$0xff]  ;;  %v624_v19 = vld [vmem:[#allocation2 + $0x8] sm:$0xff]  ;;  %v625_v20 = vld [vmem:[#allocation2 + $0x10] sm:$0xff] }
  0xa9   :  { %687 = vst [vmem:[%s1348_s3] sm:$0xff] %v623_v18  ;;  %688 = vst [vmem:[%s1348_s3 + $0x8] sm:$0xff] %v624_v19  ;;  %v626_v21 = vld [vmem:[#allocation2 + $0x18] sm:$0xff]  ;;  %v627_v22 = vld [vmem:[#allocation2 + $0x20] sm:$0xff] }
  0xaa   :  { %689 = vst [vmem:[%s1348_s3 + $0x10] sm:$0xff] %v625_v20  ;;  %v628_v23 = vld [vmem:[#allocation2 + $0x28] sm:$0xff]  ;;  %690 = vst [vmem:[%s1348_s3 + $0x18] sm:$0xff] %v626_v21  ;;  %v629_v24 = vld [vmem:[#allocation2 + $0x30] sm:$0xff] }
  0xab   :  { %691 = vst [vmem:[%s1348_s3 + $0x20] sm:$0xff] %v627_v22  ;;  %692 = vst [vmem:[%s1348_s3 + $0x28] sm:$0xff] %v628_v23  ;;  %v630_v25 = vld [vmem:[#allocation2 + $0x38] sm:$0xff]  ;;  %v631_v26 = vld [vmem:[#allocation2 + $0x40] sm:$0xff] }
  0xac   :  { %693 = vst [vmem:[%s1348_s3 + $0x30] sm:$0xff] %v629_v24  ;;  %694 = vst [vmem:[%s1348_s3 + $0x38] sm:$0xff] %v630_v25  ;;  %v632_v27 = vld [vmem:[#allocation2 + $0x48] sm:$0xff]  ;;  %v633_v28 = vld [vmem:[#allocation2 + $0x50] sm:$0xff] }
  0xad   :  { %695 = vst [vmem:[%s1348_s3 + $0x40] sm:$0xff] %v631_v26  ;;  %v634_v29 = vld [vmem:[#allocation2 + $0x58] sm:$0xff]  ;;  %696 = vst [vmem:[%s1348_s3 + $0x48] sm:$0xff] %v632_v27  ;;  %v635_v30 = vld [vmem:[#allocation2 + $0x60] sm:$0xff] }
  0xae   :  { %697 = vst [vmem:[%s1348_s3 + $0x50] sm:$0xff] %v633_v28  ;;  %698 = vst [vmem:[%s1348_s3 + $0x58] sm:$0xff] %v634_v29  ;;  %v636_v31 = vld [vmem:[#allocation2 + $0x68] sm:$0xff]  ;;  %v637_v32 = vld [vmem:[#allocation2 + $0x70] sm:$0xff] }
  0xaf   :  { %699 = vst [vmem:[%s1348_s3 + $0x60] sm:$0xff] %v635_v30  ;;  %700 = vst [vmem:[%s1348_s3 + $0x68] sm:$0xff] %v636_v31  ;;  %v638_v33 = vld [vmem:[#allocation2 + $0x78] sm:$0xff]  ;;  %v639_v34 = vld [vmem:[#allocation2 + $0x80] sm:$0xff] }
  0xb0   :  { %701 = vst [vmem:[%s1348_s3 + $0x70] sm:$0xff] %v637_v32  ;;  %v640_v35 = vld [vmem:[#allocation2 + $0x88] sm:$0xff]  ;;  %702 = vst [vmem:[%s1348_s3 + $0x78] sm:$0xff] %v638_v33  ;;  %v641_v36 = vld [vmem:[#allocation2 + $0x90] sm:$0xff] }
  0xb1   :  { %703 = vst [vmem:[%s1348_s3 + $0x80] sm:$0xff] %v639_v34  ;;  %704 = vst [vmem:[%s1348_s3 + $0x88] sm:$0xff] %v640_v35  ;;  %v642_v37 = vld [vmem:[#allocation2 + $0x98] sm:$0xff]  ;;  %v643_v38 = vld [vmem:[#allocation2 + $0xa0] sm:$0xff] }
  0xb2   :  { %705 = vst [vmem:[%s1348_s3 + $0x90] sm:$0xff] %v641_v36  ;;  %706 = vst [vmem:[%s1348_s3 + $0x98] sm:$0xff] %v642_v37  ;;  %v644_v39 = vld [vmem:[#allocation2 + $0xa8] sm:$0xff]  ;;  %v645_v40 = vld [vmem:[#allocation2 + $0xb0] sm:$0xff] }
  0xb3   :  { %707 = vst [vmem:[%s1348_s3 + $0xa0] sm:$0xff] %v643_v38  ;;  %v646_v41 = vld [vmem:[#allocation2 + $0xb8] sm:$0xff]  ;;  %708 = vst [vmem:[%s1348_s3 + $0xa8] sm:$0xff] %v644_v39  ;;  %v647_v42 = vld [vmem:[#allocation2 + $0xc0] sm:$0xff] }
  0xb4   :  { %709 = vst [vmem:[%s1348_s3 + $0xb0] sm:$0xff] %v645_v40  ;;  %710 = vst [vmem:[%s1348_s3 + $0xb8] sm:$0xff] %v646_v41  ;;  %v648_v43 = vld [vmem:[#allocation2 + $0xc8] sm:$0xff]  ;;  %v649_v44 = vld [vmem:[#allocation2 + $0xd0] sm:$0xff] }
  0xb5   :  { %711 = vst [vmem:[%s1348_s3 + $0xc0] sm:$0xff] %v647_v42  ;;  %712 = vst [vmem:[%s1348_s3 + $0xc8] sm:$0xff] %v648_v43  ;;  %v650_v45 = vld [vmem:[#allocation2 + $0xd8] sm:$0xff]  ;;  %v651_v46 = vld [vmem:[#allocation2 + $0xe0] sm:$0xff] }
  0xb6   :  { %713 = vst [vmem:[%s1348_s3 + $0xd0] sm:$0xff] %v649_v44  ;;  %v652_v47 = vld [vmem:[#allocation2 + $0xe8] sm:$0xff]  ;;  %714 = vst [vmem:[%s1348_s3 + $0xd8] sm:$0xff] %v650_v45  ;;  %v653_v48 = vld [vmem:[#allocation2 + $0xf0] sm:$0xff] }
  0xb7   :  { %715 = vst [vmem:[%s1348_s3 + $0xe0] sm:$0xff] %v651_v46  ;;  %716 = vst [vmem:[%s1348_s3 + $0xe8] sm:$0xff] %v652_v47  ;;  %v654_v49 = vld [vmem:[#allocation2 + $0xf8] sm:$0xff]  ;;  %v655_v50 = vld [vmem:[#allocation2 + $0x100] sm:$0xff] }
  0xb8   :  { %717 = vst [vmem:[%s1348_s3 + $0xf0] sm:$0xff] %v653_v48  ;;  %718 = vst [vmem:[%s1348_s3 + $0xf8] sm:$0xff] %v654_v49  ;;  %v656_v51 = vld [vmem:[#allocation2 + $0x108] sm:$0xff]  ;;  %v657_v52 = vld [vmem:[#allocation2 + $0x110] sm:$0xff] }
  0xb9   :  { %719 = vst [vmem:[%s1348_s3 + $0x100] sm:$0xff] %v655_v50  ;;  %v658_v53 = vld [vmem:[#allocation2 + $0x118] sm:$0xff]  ;;  %720 = vst [vmem:[%s1348_s3 + $0x108] sm:$0xff] %v656_v51  ;;  %v659_v54 = vld [vmem:[#allocation2 + $0x120] sm:$0xff] }
  0xba   :  { %721 = vst [vmem:[%s1348_s3 + $0x110] sm:$0xff] %v657_v52  ;;  %722 = vst [vmem:[%s1348_s3 + $0x118] sm:$0xff] %v658_v53  ;;  %v660_v55 = vld [vmem:[#allocation2 + $0x128] sm:$0xff]  ;;  %v661_v56 = vld [vmem:[#allocation2 + $0x130] sm:$0xff] }
  0xbb   :  { %723 = vst [vmem:[%s1348_s3 + $0x120] sm:$0xff] %v659_v54  ;;  %724 = vst [vmem:[%s1348_s3 + $0x128] sm:$0xff] %v660_v55  ;;  %v662_v57 = vld [vmem:[#allocation2 + $0x138] sm:$0xff]  ;;  %v663_v58 = vld [vmem:[#allocation2 + $0x140] sm:$0xff] }
  0xbc   :  { %725 = vst [vmem:[%s1348_s3 + $0x130] sm:$0xff] %v661_v56  ;;  %v664_v59 = vld [vmem:[#allocation2 + $0x148] sm:$0xff]  ;;  %726 = vst [vmem:[%s1348_s3 + $0x138] sm:$0xff] %v662_v57  ;;  %v665_v60 = vld [vmem:[#allocation2 + $0x150] sm:$0xff] }
  0xbd   :  { %727 = vst [vmem:[%s1348_s3 + $0x140] sm:$0xff] %v663_v58  ;;  %728 = vst [vmem:[%s1348_s3 + $0x148] sm:$0xff] %v664_v59  ;;  %v666_v61 = vld [vmem:[#allocation2 + $0x158] sm:$0xff]  ;;  %v667_v62 = vld [vmem:[#allocation2 + $0x160] sm:$0xff] }
  0xbe   :  { %729 = vst [vmem:[%s1348_s3 + $0x150] sm:$0xff] %v665_v60  ;;  %730 = vst [vmem:[%s1348_s3 + $0x158] sm:$0xff] %v666_v61  ;;  %v668_v63 = vld [vmem:[#allocation2 + $0x168] sm:$0xff]  ;;  %v669_v0 = vld [vmem:[#allocation2 + $0x170] sm:$0xff] }
  0xbf   :  { %731 = vst [vmem:[%s1348_s3 + $0x160] sm:$0xff] %v667_v62  ;;  %v670_v1 = vld [vmem:[#allocation2 + $0x178] sm:$0xff]  ;;  %732 = vst [vmem:[%s1348_s3 + $0x168] sm:$0xff] %v668_v63  ;;  %v671_v2 = vld [vmem:[#allocation2 + $0x180] sm:$0xff] }
  0xc0   :  { %733 = vst [vmem:[%s1348_s3 + $0x170] sm:$0xff] %v669_v0  ;;  %734 = vst [vmem:[%s1348_s3 + $0x178] sm:$0xff] %v670_v1  ;;  %v672_v3 = vld [vmem:[#allocation2 + $0x188] sm:$0xff]  ;;  %v673_v4 = vld [vmem:[#allocation2 + $0x190] sm:$0xff] }
  0xc1   :  { %735 = vst [vmem:[%s1348_s3 + $0x180] sm:$0xff] %v671_v2  ;;  %736 = vst [vmem:[%s1348_s3 + $0x188] sm:$0xff] %v672_v3  ;;  %v674_v5 = vld [vmem:[#allocation2 + $0x198] sm:$0xff]  ;;  %v675_v6 = vld [vmem:[#allocation2 + $0x1a0] sm:$0xff] }
  0xc2   :  { %737 = vst [vmem:[%s1348_s3 + $0x190] sm:$0xff] %v673_v4  ;;  %v676_v7 = vld [vmem:[#allocation2 + $0x1a8] sm:$0xff]  ;;  %738 = vst [vmem:[%s1348_s3 + $0x198] sm:$0xff] %v674_v5  ;;  %v677_v8 = vld [vmem:[#allocation2 + $0x1b0] sm:$0xff] }
  0xc3   :  { %739 = vst [vmem:[%s1348_s3 + $0x1a0] sm:$0xff] %v675_v6  ;;  %740 = vst [vmem:[%s1348_s3 + $0x1a8] sm:$0xff] %v676_v7  ;;  %v678_v9 = vld [vmem:[#allocation2 + $0x1b8] sm:$0xff]  ;;  %v679_v10 = vld [vmem:[#allocation2 + $0x1c0] sm:$0xff] }
  0xc4   :  { %741 = vst [vmem:[%s1348_s3 + $0x1b0] sm:$0xff] %v677_v8  ;;  %742 = vst [vmem:[%s1348_s3 + $0x1b8] sm:$0xff] %v678_v9  ;;  %v680_v11 = vld [vmem:[#allocation2 + $0x1c8] sm:$0xff]  ;;  %v681_v12 = vld [vmem:[#allocation2 + $0x1d0] sm:$0xff] }
  0xc5   :  { %743 = vst [vmem:[%s1348_s3 + $0x1c0] sm:$0xff] %v679_v10  ;;  %v682_v13 = vld [vmem:[#allocation2 + $0x1d8] sm:$0xff]  ;;  %744 = vst [vmem:[%s1348_s3 + $0x1c8] sm:$0xff] %v680_v11  ;;  %v683_v14 = vld [vmem:[#allocation2 + $0x1e0] sm:$0xff] }
  0xc6   :  { %745 = vst [vmem:[%s1348_s3 + $0x1d0] sm:$0xff] %v681_v12  ;;  %746 = vst [vmem:[%s1348_s3 + $0x1d8] sm:$0xff] %v682_v13  ;;  %v684_v15 = vld [vmem:[#allocation2 + $0x1e8] sm:$0xff]  ;;  %v685_v16 = vld [vmem:[#allocation2 + $0x1f0] sm:$0xff] }
  0xc7   :  { %747 = vst [vmem:[%s1348_s3 + $0x1e0] sm:$0xff] %v683_v14  ;;  %748 = vst [vmem:[%s1348_s3 + $0x1e8] sm:$0xff] %v684_v15  ;;  %v686_v17 = vld [vmem:[#allocation2 + $0x1f8] sm:$0xff] }
  0xc8   :  { %749 = vst [vmem:[%s1348_s3 + $0x1f0] sm:$0xff] %v685_v16  ;;  %750 = vst [vmem:[%s1348_s3 + $0x1f8] sm:$0xff] %v686_v17 }
  0xc9   :  { %755 = vsyncmov [#allocation3] }
  0xcc   :  { %s756_s22 = vpop.sfrf %755 }
  0xcd   :  { %p1001_p7 = scmp.ne.s32.totalorder %s756_s22, 0 }
  0xcf   :  { %760 = shalt.err (%p1001_p7)  }
  0xd0   :  { %762 = vsyncmov [#allocation3 + $0x1] }
  0xd3   :  { %s763_s0 = vpop.sfrf %762 }
  0xd4   :  { %p1002_p8 = scmp.ne.s32.totalorder %s763_s0, 0 }
  0xd6   :  { %767 = shalt.err (%p1002_p8)  }
  0xd7   :  { %769 = vsyncmov [#allocation3 + $0x2] }
  0xda   :  { %s770_s28 = vpop.sfrf %769 }
  0xdb   :  { %p1003_p9 = scmp.ne.s32.totalorder %s770_s28, 0 }
  0xdd   :  { %774 = shalt.err (%p1003_p9)  }
  0xde   :  { %776 = vsyncmov [#allocation3 + $0x3] }
  0xe1   :  { %s777_s29 = vpop.sfrf %776 }
  0xe2   :  { %p1004_p10 = scmp.ne.s32.totalorder %s777_s29, 0 }
  0xe4   :  { %781 = shalt.err (%p1004_p10)  }
  0xe5   :  { %783 = vsyncmov [#allocation3 + $0x4] }
  0xe8   :  { %s784_s30 = vpop.sfrf %783 }
  0xe9   :  { %p1005_p11 = scmp.ne.s32.totalorder %s784_s30, 0 }
  0xeb   :  { %788 = shalt.err (%p1005_p11)  }
  0xec   :  { %790 = vsyncmov [#allocation3 + $0x5] }
  0xef   :  { %s791_s3 = vpop.sfrf %790 }
  0xf0   :  { %p1006_p12 = scmp.ne.s32.totalorder %s791_s3, 0 }
  0xf2   :  { %795 = shalt.err (%p1006_p12)  }
  0xf3   :  { %797 = vsyncmov [#allocation3 + $0x6] }
  0xf6   :  { %s798_s4 = vpop.sfrf %797 }
  0xf7   :  { %p1007_p13 = scmp.ne.s32.totalorder %s798_s4, 0 }
  0xf9   :  { %802 = shalt.err (%p1007_p13)  }
  0xfa   :  { %804 = vsyncmov [#allocation3 + $0x7] }
  0xfd   :  { %s805_s5 = vpop.sfrf %804 }
  0xfe   :  { %p1008_p0 = scmp.ne.s32.totalorder %s805_s5, 0 }
 0x100   :  { %809 = shalt.err (%p1008_p0)  }

</bundles_post_ra>
